<compile_context>
chip_gen: v7x
topology: tpu7x:2x2x1
jax: 0.10.0
libtpu: 0.0.40
codegen_flags: <defaults>
</compile_context>

<pallas_src>
import math
import functools

import jax
import jax.numpy as jnp
from jax.experimental import pallas as pl
from jax.experimental.pallas import tpu as pltpu

LANE = 128


def _round_up(n, m):
    return ((n + m - 1) // m) * m


def _device_kind():
    try:
        return jax.devices()[0].device_kind.lower()
    except Exception:
        return ""


def _is_v5e(kind=None):
    kind = _device_kind() if kind is None else kind
    return ("v5e" in kind) or ("v5 lite" in kind) or ("v5litepod" in kind)


def _vmem_capacity_bytes():
    try:
        info = pltpu.get_tpu_info()
        cap = int(getattr(info, "vmem_capacity_bytes", 0) or 0)
        if cap > 0:
            return cap
    except Exception:
        pass
    return 64 << 20  # conservative default (v7x physical VMEM)


# --------------------------------------------------------------------------
# Kernel
# --------------------------------------------------------------------------
def _discriminator_kernel(num_layers, bf16_act, *refs):
    """refs = [x_bf16, (w_i bf16, b_i f32) * num_layers, wl_row f32, bl f32, out]"""
    x_ref = refs[0]
    out_ref = refs[-1]
    p = refs[1:-1]

    h = x_ref[...]  # (TB, in_pad) bf16
    # Hidden layers: Linear (bf16 MXU inputs, fp32 accumulate) -> tanh.
    for i in range(num_layers):
        w = p[2 * i][...]        # (in_pad or hid_pad, hid_pad) bf16
        b = p[2 * i + 1][...]    # (1, hid_pad)                 fp32
        acc = jnp.dot(h.astype(jnp.bfloat16), w,
                      preferred_element_type=jnp.float32)
        z = acc + b              # fp32 bias add
        if bf16_act:
            # bf16 tanh uses the EUP bf16 path on v6e/v7x (the binding unit);
            # padded lanes stay inert: tanh(0) == 0.
            h = jnp.tanh(z.astype(jnp.bfloat16))
        else:
            h = jnp.tanh(z)

    # Logic layer (hidden -> 1): VPU multiply + lane reduce (no 1-lane matmul).
    wl = p[2 * num_layers][...]      # (1, hid_pad) fp32, zero in padded lanes
    bl = p[2 * num_layers + 1][...]  # (1, 1)       fp32
    logit = jnp.sum(h.astype(jnp.float32) * wl, axis=-1, keepdims=True) + bl
    prob = jax.nn.sigmoid(logit)     # (TB, 1) fp32

    # Narrow (TB, 1) store: tiny HBM write traffic, no broadcast slab.
    out_ref[...] = prob.astype(out_ref.dtype)


# --------------------------------------------------------------------------
# Wrapper
# --------------------------------------------------------------------------
def discriminator_forward(x, packed_params, num_layers, *,
                          block_rows=None, bf16_act=None):
    """x: (batch, num_inputs) fp32.  packed_params: output of
    pack_discriminator_params (padded, weights bf16).  Returns (batch, 1) f32."""
    batch = x.shape[0]
    in_pad = packed_params[0].shape[0]
    hid_pad = packed_params[0].shape[1]

    kind = _device_kind()
    if bf16_act is None:
        bf16_act = not _is_v5e(kind)   # v5e has no bf16 EUP/VPU path

    vmem_cap = _vmem_capacity_bytes()

    # Tile selection: big tiles amortize per-step overhead (larger default on
    # 128 MiB-VMEM parts), clamped to the (padded) batch; force >= 2 grid
    # steps when the batch allows so v7x's two TensorCores both get work.
    if block_rows is None:
        block_rows = 1024 if vmem_cap >= (96 << 20) else 512
    tb = max(8, _round_up(min(block_rows, _round_up(batch, 8)), 8))
    if batch > 8 and _round_up(batch, tb) // tb < 2:
        tb = max(8, _round_up((batch + 1) // 2, 8))
    batch_pad = _round_up(batch, tb)

    # bf16 x: halves x DMA and the x double-buffer; zero padding keeps padded
    # rows/lanes inert in the dot products.
    x_pad = jnp.zeros((batch_pad, in_pad), jnp.bfloat16)
    x_pad = x_pad.at[:batch, : x.shape[1]].set(x.astype(jnp.bfloat16))

    kernel = functools.partial(_discriminator_kernel, num_layers, bf16_act)

    # Generation/activation-aware VMEM budget: params (single or double
    # buffered), double-buffered x/out tiles, fp32 activation temporaries,
    # 2x headroom, capped at ~80% of the physical VMEM of this generation.
    param_bytes = sum(int(p.size) * p.dtype.itemsize for p in packed_params)
    x_tile_bytes = tb * in_pad * 2            # bf16 x tile
    out_tile_bytes = tb * LANE * 4            # (tb, 1) tile, lane-padded layout
    act_bytes = 3 * tb * hid_pad * 4          # fp32 acc / h intermediates

    def _vmem_limit(param_buffers):
        need = (param_buffers * param_bytes
                + 2 * (x_tile_bytes + out_tile_bytes) + act_bytes)
        return int(min(max(2 * need, 32 << 20), int(vmem_cap * 0.8)))

    grid = (batch_pad // tb,)
    out_shape = jax.ShapeDtypeStruct((batch_pad, 1), jnp.float32)

    def _build(single_buffer_params):
        in_specs = [pl.BlockSpec((tb, in_pad), lambda i: (i, 0))]
        for prm in packed_params:
            if single_buffer_params:
                # Constant block index -> VMEM-resident; single buffer halves
                # the resident-weight footprint.
                in_specs.append(pl.BlockSpec(prm.shape, lambda i: (0, 0),
                                             pipeline_mode=pl.Buffered(1)))
            else:
                in_specs.append(pl.BlockSpec(prm.shape, lambda i: (0, 0)))
        out_spec = pl.BlockSpec((tb, 1), lambda i: (i, 0))
        return pl.pallas_call(
            kernel,
            out_shape=out_shape,
            grid=grid,
            in_specs=in_specs,
            out_specs=out_spec,
            compiler_params=pltpu.CompilerParams(
                dimension_semantics=("parallel",),
                vmem_limit_bytes=_vmem_limit(1 if single_buffer_params else 2),
            ),
        )

    try:
        out = _build(True)(x_pad, *packed_params)
    except Exception:
        # Fallback if single-buffered pipeline_mode is unsupported on this
        # jax/libtpu combination: default double-buffering (still correct).
        out = _build(False)(x_pad, *packed_params)

    return out[:batch]


# --------------------------------------------------------------------------
# Parameter init (PyTorch nn.Linear defaults) and packing (padding + bf16)
# --------------------------------------------------------------------------
def init_discriminator_params(key, num_inputs, layers=3, hidden_size=400):
    """Logical params mirroring nn.Linear defaults.  Weights stored as
    (in, out) == PyTorch weight.T.  Logic layer: weight *= 0.1, bias *= 0.0."""
    params = []
    fan_ins = [num_inputs] + [hidden_size] * (layers - 1)
    for i in range(layers):
        key, kw, kb = jax.random.split(key, 3)
        bound = 1.0 / math.sqrt(fan_ins[i])
        w = jax.random.uniform(kw, (fan_ins[i], hidden_size), jnp.float32,
                               -bound, bound)
        b = jax.random.uniform(kb, (hidden_size,), jnp.float32, -bound, bound)
        params.append((w, b))
    key, kw, kb = jax.random.split(key, 3)
    bound = 1.0 / math.sqrt(hidden_size)
    wl = jax.random.uniform(kw, (hidden_size, 1), jnp.float32, -bound, bound) * 0.1
    bl = jnp.zeros((1,), jnp.float32)  # bias * 0.0
    params.append((wl, bl))
    return params


def pack_discriminator_params(params, num_layers, num_inputs, hidden_size):
    """Pad every dim to a 128-lane multiple (zero-filled so padded lanes are
    inert), cast matmul weights to bf16, keep biases / logic row in fp32."""
    in_pad = _round_up(num_inputs, LANE)
    hid_pad = _round_up(hidden_size, LANE)
    packed = []
    for i in range(num_layers):
        w, b = params[i]
        fan_in_pad = in_pad if i == 0 else hid_pad
        w_p = jnp.zeros((fan_in_pad, hid_pad), jnp.float32)
        w_p = w_p.at[: w.shape[0], : w.shape[1]].set(w)
        b_p = jnp.zeros((1, hid_pad), jnp.float32)
        b_p = b_p.at[0, : b.shape[0]].set(b)
        packed += [w_p.astype(jnp.bfloat16), b_p]
    wl, bl = params[num_layers]
    wl_row = jnp.zeros((1, hid_pad), jnp.float32)
    wl_row = wl_row.at[0, : wl.shape[0]].set(wl[:, 0])
    bl_p = jnp.reshape(bl, (1, 1)).astype(jnp.float32)
    packed += [wl_row, bl_p]
    return packed


# --------------------------------------------------------------------------
# References
# --------------------------------------------------------------------------
def reference_forward_fp32(x, params, num_layers):
    """Exact fp32 module semantics (the semantic bound)."""
    h = x
    for i in range(num_layers):
        w, b = params[i]
        h = jnp.tanh(h @ w + b)
    wl, bl = params[num_layers]
    return jax.nn.sigmoid(h @ wl + bl)


def reference_forward_mirror(x, params, num_layers, bf16_act):
    """Mirror the kernel math: bf16 x / matmul inputs, fp32 accumulate + bias,
    optional bf16 activations, fp32 head."""
    h = x.astype(jnp.bfloat16)
    for i in range(num_layers):
        w, b = params[i]
        acc = jnp.dot(h.astype(jnp.bfloat16), w.astype(jnp.bfloat16),
                      preferred_element_type=jnp.float32) + b
        h = jnp.tanh(acc.astype(jnp.bfloat16)) if bf16_act else jnp.tanh(acc)
    wl, bl = params[num_layers]
    logit = jnp.sum(h.astype(jnp.float32) * wl[:, 0][None, :],
                    axis=-1, keepdims=True) + bl
    return jax.nn.sigmoid(logit)


if __name__ == "__main__":
    key = jax.random.PRNGKey(0)

    # Small shapes consistent with the module: exercises dim padding
    # (16 -> 128, 32 -> 128), batch padding and a >= 2-step grid.
    batch, num_inputs, layers, hidden_size = 300, 16, 3, 32

    key, kx = jax.random.split(key)
    x = jax.random.normal(kx, (batch, num_inputs), jnp.float32)

    params = init_discriminator_params(key, num_inputs, layers, hidden_size)
    packed = pack_discriminator_params(params, layers, num_inputs, hidden_size)

    bf16_act = not _is_v5e()
    prob = discriminator_forward(x, packed, layers, bf16_act=bf16_act)
    prob = jax.block_until_ready(prob)
    assert prob.shape == (batch, 1)

    # Check vs a reference that mirrors the kernel's reduced-precision math.
    ref_mirror = reference_forward_mirror(x, params, layers, bf16_act)
    assert jnp.allclose(prob, ref_mirror, atol=1e-2, rtol=1e-2), (
        float(jnp.max(jnp.abs(prob - ref_mirror))))

    # Loose check vs the exact fp32 module semantics.
    ref_fp32 = reference_forward_fp32(x, params, layers)
    assert jnp.allclose(prob, ref_fp32, atol=5e-2, rtol=5e-2), (
        float(jnp.max(jnp.abs(prob - ref_fp32))))

    print("KERNEL_OK")
</pallas_src>

<mosaic_0001>
module attributes {stable_mosaic.version = 11 : i64} {
  func.func @_discriminator_kernel(%arg0: i32, %arg1: memref<152x128xbf16, #tpu.memory_space<vmem>>, %arg2: memref<128x128xbf16, #tpu.memory_space<vmem>>, %arg3: memref<1x128xf32, #tpu.memory_space<vmem>>, %arg4: memref<128x128xbf16, #tpu.memory_space<vmem>>, %arg5: memref<1x128xf32, #tpu.memory_space<vmem>>, %arg6: memref<128x128xbf16, #tpu.memory_space<vmem>>, %arg7: memref<1x128xf32, #tpu.memory_space<vmem>>, %arg8: memref<1x128xf32, #tpu.memory_space<vmem>>, %arg9: memref<1x1xf32, #tpu.memory_space<vmem>>, %arg10: memref<152x1xf32, #tpu.memory_space<vmem>>) attributes {dimension_semantics = [#tpu.dimension_semantics<parallel>], iteration_bounds = array<i64: 2>, scalar_prefetch = 0 : i64, scratch_operands = 0 : i64, tpu.core_type = #tpu.core_type<tc>, window_params = [{transform_indices = @transform_0, window_bounds = array<i64: 152, 128>}, {pipeline_mode = #tpu.pipeline_mode<synchronous>, transform_indices = @transform_1, window_bounds = array<i64: 128, 128>}, {pipeline_mode = #tpu.pipeline_mode<synchronous>, transform_indices = @transform_2, window_bounds = array<i64: 1, 128>}, {pipeline_mode = #tpu.pipeline_mode<synchronous>, transform_indices = @transform_3, window_bounds = array<i64: 128, 128>}, {pipeline_mode = #tpu.pipeline_mode<synchronous>, transform_indices = @transform_4, window_bounds = array<i64: 1, 128>}, {pipeline_mode = #tpu.pipeline_mode<synchronous>, transform_indices = @transform_5, window_bounds = array<i64: 128, 128>}, {pipeline_mode = #tpu.pipeline_mode<synchronous>, transform_indices = @transform_6, window_bounds = array<i64: 1, 128>}, {pipeline_mode = #tpu.pipeline_mode<synchronous>, transform_indices = @transform_7, window_bounds = array<i64: 1, 128>}, {pipeline_mode = #tpu.pipeline_mode<synchronous>, transform_indices = @transform_8, window_bounds = array<i64: 1, 1>}, {transform_indices = @transform_9, window_bounds = array<i64: 152, 1>}]} {
    %c0 = arith.constant 0 : index
    %c0_0 = arith.constant 0 : index
    %0 = vector.load %arg1[%c0, %c0_0] : memref<152x128xbf16, #tpu.memory_space<vmem>>, vector<152x128xbf16>
    %c0_1 = arith.constant 0 : index
    %c0_2 = arith.constant 0 : index
    %1 = vector.load %arg2[%c0_1, %c0_2] : memref<128x128xbf16, #tpu.memory_space<vmem>>, vector<128x128xbf16>
    %c0_3 = arith.constant 0 : index
    %c0_4 = arith.constant 0 : index
    %2 = vector.load %arg3[%c0_3, %c0_4] : memref<1x128xf32, #tpu.memory_space<vmem>>, vector<1x128xf32>
    %cst = arith.constant dense<0.000000e+00> : vector<152x128xf32>
    %3 = tpu.matmul %0, %1, %cst {dimension_numbers = #tpu.dot_dimension_numbers<[1], [0], [0], [1], [0, 0, 1, 1], [], []>} : vector<152x128xbf16>, vector<128x128xbf16>, vector<152x128xf32> -> vector<152x128xf32>
    %4 = vector.broadcast %2 : vector<1x128xf32> to vector<152x128xf32>
    %5 = arith.addf %3, %4 : vector<152x128xf32>
    %6 = arith.truncf %5 : vector<152x128xf32> to vector<152x128xbf16>
    %7 = math.tanh %6 : vector<152x128xbf16>
    %c0_5 = arith.constant 0 : index
    %c0_6 = arith.constant 0 : index
    %8 = vector.load %arg4[%c0_5, %c0_6] : memref<128x128xbf16, #tpu.memory_space<vmem>>, vector<128x128xbf16>
    %c0_7 = arith.constant 0 : index
    %c0_8 = arith.constant 0 : index
    %9 = vector.load %arg5[%c0_7, %c0_8] : memref<1x128xf32, #tpu.memory_space<vmem>>, vector<1x128xf32>
    %cst_9 = arith.constant dense<0.000000e+00> : vector<152x128xf32>
    %10 = tpu.matmul %7, %8, %cst_9 {dimension_numbers = #tpu.dot_dimension_numbers<[1], [0], [0], [1], [0, 0, 1, 1], [], []>} : vector<152x128xbf16>, vector<128x128xbf16>, vector<152x128xf32> -> vector<152x128xf32>
    %11 = vector.broadcast %9 : vector<1x128xf32> to vector<152x128xf32>
    %12 = arith.addf %10, %11 : vector<152x128xf32>
    %13 = arith.truncf %12 : vector<152x128xf32> to vector<152x128xbf16>
    %14 = math.tanh %13 : vector<152x128xbf16>
    %c0_10 = arith.constant 0 : index
    %c0_11 = arith.constant 0 : index
    %15 = vector.load %arg6[%c0_10, %c0_11] : memref<128x128xbf16, #tpu.memory_space<vmem>>, vector<128x128xbf16>
    %c0_12 = arith.constant 0 : index
    %c0_13 = arith.constant 0 : index
    %16 = vector.load %arg7[%c0_12, %c0_13] : memref<1x128xf32, #tpu.memory_space<vmem>>, vector<1x128xf32>
    %cst_14 = arith.constant dense<0.000000e+00> : vector<152x128xf32>
    %17 = tpu.matmul %14, %15, %cst_14 {dimension_numbers = #tpu.dot_dimension_numbers<[1], [0], [0], [1], [0, 0, 1, 1], [], []>} : vector<152x128xbf16>, vector<128x128xbf16>, vector<152x128xf32> -> vector<152x128xf32>
    %18 = vector.broadcast %16 : vector<1x128xf32> to vector<152x128xf32>
    %19 = arith.addf %17, %18 : vector<152x128xf32>
    %20 = arith.truncf %19 : vector<152x128xf32> to vector<152x128xbf16>
    %21 = math.tanh %20 : vector<152x128xbf16>
    %c0_15 = arith.constant 0 : index
    %c0_16 = arith.constant 0 : index
    %22 = vector.load %arg8[%c0_15, %c0_16] : memref<1x128xf32, #tpu.memory_space<vmem>>, vector<1x128xf32>
    %c0_17 = arith.constant 0 : index
    %c0_18 = arith.constant 0 : index
    %23 = vector.load %arg9[%c0_17, %c0_18] : memref<1x1xf32, #tpu.memory_space<vmem>>, vector<1x1xf32>
    %24 = arith.extf %21 : vector<152x128xbf16> to vector<152x128xf32>
    %25 = vector.broadcast %22 : vector<1x128xf32> to vector<152x128xf32>
    %26 = arith.mulf %24, %25 : vector<152x128xf32>
    %cst_19 = arith.constant dense<0.000000e+00> : vector<152xf32>
    %27 = vector.multi_reduction <add>, %26, %cst_19 [1] : vector<152x128xf32> to vector<152xf32>
    %28 = vector.shape_cast %27 : vector<152xf32> to vector<152x1xf32>
    %29 = vector.broadcast %23 : vector<1x1xf32> to vector<152x1xf32>
    %30 = arith.addf %28, %29 : vector<152x1xf32>
    %31 = arith.negf %30 : vector<152x1xf32>
    %32 = math.exp %31 : vector<152x1xf32>
    %cst_20 = arith.constant 1.000000e+00 : f32
    %33 = vector.broadcast %cst_20 : f32 to vector<152x1xf32>
    %34 = arith.addf %33, %32 : vector<152x1xf32>
    %35 = arith.divf %33, %34 : vector<152x1xf32>
    %c0_21 = arith.constant 0 : index
    %c0_22 = arith.constant 0 : index
    %36 = vector.load %arg10[%c0_21, %c0_22] : memref<152x1xf32, #tpu.memory_space<vmem>>, vector<152x1xf32>
    tpu.vector_store %arg10[%c0_21, %c0_22], %35 {strides = array<i32>} : memref<152x1xf32, #tpu.memory_space<vmem>>, vector<152x1xf32>,
    return
  }
  func.func @transform_0(%arg0: i32) -> (i32, i32) {
    %c0_i32 = arith.constant 0 : i32
    %c0_i32_0 = arith.constant 0 : i32
    return %arg0, %c0_i32 : i32, i32
  }
  func.func @transform_1(%arg0: i32) -> (i32, i32) {
    %c0_i32 = arith.constant 0 : i32
    %c0_i32_0 = arith.constant 0 : i32
    %c0_i32_1 = arith.constant 0 : i32
    return %c0_i32, %c0_i32_0 : i32, i32
  }
  func.func @transform_2(%arg0: i32) -> (i32, i32) {
    %c0_i32 = arith.constant 0 : i32
    %c0_i32_0 = arith.constant 0 : i32
    %c0_i32_1 = arith.constant 0 : i32
    return %c0_i32, %c0_i32_0 : i32, i32
  }
  func.func @transform_3(%arg0: i32) -> (i32, i32) {
    %c0_i32 = arith.constant 0 : i32
    %c0_i32_0 = arith.constant 0 : i32
    %c0_i32_1 = arith.constant 0 : i32
    return %c0_i32, %c0_i32_0 : i32, i32
  }
  func.func @transform_4(%arg0: i32) -> (i32, i32) {
    %c0_i32 = arith.constant 0 : i32
    %c0_i32_0 = arith.constant 0 : i32
    %c0_i32_1 = arith.constant 0 : i32
    return %c0_i32, %c0_i32_0 : i32, i32
  }
  func.func @transform_5(%arg0: i32) -> (i32, i32) {
    %c0_i32 = arith.constant 0 : i32
    %c0_i32_0 = arith.constant 0 : i32
    %c0_i32_1 = arith.constant 0 : i32
    return %c0_i32, %c0_i32_0 : i32, i32
  }
  func.func @transform_6(%arg0: i32) -> (i32, i32) {
    %c0_i32 = arith.constant 0 : i32
    %c0_i32_0 = arith.constant 0 : i32
    %c0_i32_1 = arith.constant 0 : i32
    return %c0_i32, %c0_i32_0 : i32, i32
  }
  func.func @transform_7(%arg0: i32) -> (i32, i32) {
    %c0_i32 = arith.constant 0 : i32
    %c0_i32_0 = arith.constant 0 : i32
    %c0_i32_1 = arith.constant 0 : i32
    return %c0_i32, %c0_i32_0 : i32, i32
  }
  func.func @transform_8(%arg0: i32) -> (i32, i32) {
    %c0_i32 = arith.constant 0 : i32
    %c0_i32_0 = arith.constant 0 : i32
    %c0_i32_1 = arith.constant 0 : i32
    return %c0_i32, %c0_i32_0 : i32, i32
  }
  func.func @transform_9(%arg0: i32) -> (i32, i32) {
    %c0_i32 = arith.constant 0 : i32
    %c0_i32_0 = arith.constant 0 : i32
    return %arg0, %c0_i32 : i32, i32
  }
}

module attributes {stable_mosaic.version = 11 : i64} {
  func.func @_discriminator_kernel(%arg0: i32, %arg1: memref<152x128xbf16, #tpu.memory_space<vmem>>, %arg2: memref<128x128xbf16, #tpu.memory_space<vmem>>, %arg3: memref<1x128xf32, #tpu.memory_space<vmem>>, %arg4: memref<128x128xbf16, #tpu.memory_space<vmem>>, %arg5: memref<1x128xf32, #tpu.memory_space<vmem>>, %arg6: memref<128x128xbf16, #tpu.memory_space<vmem>>, %arg7: memref<1x128xf32, #tpu.memory_space<vmem>>, %arg8: memref<1x128xf32, #tpu.memory_space<vmem>>, %arg9: memref<1x1xf32, #tpu.memory_space<vmem>>, %arg10: memref<152x1xf32, #tpu.memory_space<vmem>>) attributes {dimension_semantics = [#tpu.dimension_semantics<parallel>], iteration_bounds = array<i64: 2>, scalar_prefetch = 0 : i64, scratch_operands = 0 : i64, tpu.core_type = #tpu.core_type<tc>, window_params = [{transform_indices = @transform_0, window_bounds = array<i64: 152, 128>}, {pipeline_mode = #tpu.pipeline_mode<synchronous>, transform_indices = @transform_1, window_bounds = array<i64: 128, 128>}, {pipeline_mode = #tpu.pipeline_mode<synchronous>, transform_indices = @transform_2, window_bounds = array<i64: 1, 128>}, {pipeline_mode = #tpu.pipeline_mode<synchronous>, transform_indices = @transform_3, window_bounds = array<i64: 128, 128>}, {pipeline_mode = #tpu.pipeline_mode<synchronous>, transform_indices = @transform_4, window_bounds = array<i64: 1, 128>}, {pipeline_mode = #tpu.pipeline_mode<synchronous>, transform_indices = @transform_5, window_bounds = array<i64: 128, 128>}, {pipeline_mode = #tpu.pipeline_mode<synchronous>, transform_indices = @transform_6, window_bounds = array<i64: 1, 128>}, {pipeline_mode = #tpu.pipeline_mode<synchronous>, transform_indices = @transform_7, window_bounds = array<i64: 1, 128>}, {pipeline_mode = #tpu.pipeline_mode<synchronous>, transform_indices = @transform_8, window_bounds = array<i64: 1, 1>}, {transform_indices = @transform_9, window_bounds = array<i64: 152, 1>}]} {
    %c0 = arith.constant 0 : index
    %c0_0 = arith.constant 0 : index
    %0 = vector.load %arg1[%c0, %c0_0] : memref<152x128xbf16, #tpu.memory_space<vmem>>, vector<152x128xbf16>
    %c0_1 = arith.constant 0 : index
    %c0_2 = arith.constant 0 : index
    %1 = vector.load %arg2[%c0_1, %c0_2] : memref<128x128xbf16, #tpu.memory_space<vmem>>, vector<128x128xbf16>
    %c0_3 = arith.constant 0 : index
    %c0_4 = arith.constant 0 : index
    %2 = vector.load %arg3[%c0_3, %c0_4] : memref<1x128xf32, #tpu.memory_space<vmem>>, vector<1x128xf32>
    %cst = arith.constant dense<0.000000e+00> : vector<152x128xf32>
    %3 = tpu.matmul %0, %1, %cst {dimension_numbers = #tpu.dot_dimension_numbers<[1], [0], [0], [1], [0, 0, 1, 1], [], []>} : vector<152x128xbf16>, vector<128x128xbf16>, vector<152x128xf32> -> vector<152x128xf32>
    %4 = vector.broadcast %2 : vector<1x128xf32> to vector<152x128xf32>
    %5 = arith.addf %3, %4 : vector<152x128xf32>
    %6 = arith.truncf %5 : vector<152x128xf32> to vector<152x128xbf16>
    %7 = math.tanh %6 : vector<152x128xbf16>
    %c0_5 = arith.constant 0 : index
    %c0_6 = arith.constant 0 : index
    %8 = vector.load %arg4[%c0_5, %c0_6] : memref<128x128xbf16, #tpu.memory_space<vmem>>, vector<128x128xbf16>
    %c0_7 = arith.constant 0 : index
    %c0_8 = arith.constant 0 : index
    %9 = vector.load %arg5[%c0_7, %c0_8] : memref<1x128xf32, #tpu.memory_space<vmem>>, vector<1x128xf32>
    %cst_9 = arith.constant dense<0.000000e+00> : vector<152x128xf32>
    %10 = tpu.matmul %7, %8, %cst_9 {dimension_numbers = #tpu.dot_dimension_numbers<[1], [0], [0], [1], [0, 0, 1, 1], [], []>} : vector<152x128xbf16>, vector<128x128xbf16>, vector<152x128xf32> -> vector<152x128xf32>
    %11 = vector.broadcast %9 : vector<1x128xf32> to vector<152x128xf32>
    %12 = arith.addf %10, %11 : vector<152x128xf32>
    %13 = arith.truncf %12 : vector<152x128xf32> to vector<152x128xbf16>
    %14 = math.tanh %13 : vector<152x128xbf16>
    %c0_10 = arith.constant 0 : index
    %c0_11 = arith.constant 0 : index
    %15 = vector.load %arg6[%c0_10, %c0_11] : memref<128x128xbf16, #tpu.memory_space<vmem>>, vector<128x128xbf16>
    %c0_12 = arith.constant 0 : index
    %c0_13 = arith.constant 0 : index
    %16 = vector.load %arg7[%c0_12, %c0_13] : memref<1x128xf32, #tpu.memory_space<vmem>>, vector<1x128xf32>
    %cst_14 = arith.constant dense<0.000000e+00> : vector<152x128xf32>
    %17 = tpu.matmul %14, %15, %cst_14 {dimension_numbers = #tpu.dot_dimension_numbers<[1], [0], [0], [1], [0, 0, 1, 1], [], []>} : vector<152x128xbf16>, vector<128x128xbf16>, vector<152x128xf32> -> vector<152x128xf32>
    %18 = vector.broadcast %16 : vector<1x128xf32> to vector<152x128xf32>
    %19 = arith.addf %17, %18 : vector<152x128xf32>
    %20 = arith.truncf %19 : vector<152x128xf32> to vector<152x128xbf16>
    %21 = math.tanh %20 : vector<152x128xbf16>
    %c0_15 = arith.constant 0 : index
    %c0_16 = arith.constant 0 : index
    %22 = vector.load %arg8[%c0_15, %c0_16] : memref<1x128xf32, #tpu.memory_space<vmem>>, vector<1x128xf32>
    %c0_17 = arith.constant 0 : index
    %c0_18 = arith.constant 0 : index
    %23 = vector.load %arg9[%c0_17, %c0_18] : memref<1x1xf32, #tpu.memory_space<vmem>>, vector<1x1xf32>
    %24 = arith.extf %21 : vector<152x128xbf16> to vector<152x128xf32>
    %25 = vector.broadcast %22 : vector<1x128xf32> to vector<152x128xf32>
    %26 = arith.mulf %24, %25 : vector<152x128xf32>
    %cst_19 = arith.constant dense<0.000000e+00> : vector<152xf32>
    %27 = vector.multi_reduction <add>, %26, %cst_19 [1] : vector<152x128xf32> to vector<152xf32>
    %28 = vector.shape_cast %27 : vector<152xf32> to vector<152x1xf32>
    %29 = vector.broadcast %23 : vector<1x1xf32> to vector<152x1xf32>
    %30 = arith.addf %28, %29 : vector<152x1xf32>
    %31 = arith.negf %30 : vector<152x1xf32>
    %32 = math.exp %31 : vector<152x1xf32>
    %cst_20 = arith.constant 1.000000e+00 : f32
    %33 = vector.broadcast %cst_20 : f32 to vector<152x1xf32>
    %34 = arith.addf %33, %32 : vector<152x1xf32>
    %35 = arith.divf %33, %34 : vector<152x1xf32>
    %c0_21 = arith.constant 0 : index
    %c0_22 = arith.constant 0 : index
    %36 = vector.load %arg10[%c0_21, %c0_22] : memref<152x1xf32, #tpu.memory_space<vmem>>, vector<152x1xf32>
    tpu.vector_store %arg10[%c0_21, %c0_22], %35 {strides = array<i32>} : memref<152x1xf32, #tpu.memory_space<vmem>>, vector<152x1xf32>,
    return
  }
  func.func @transform_0(%arg0: i32) -> (i32, i32) {
    %c0_i32 = arith.constant 0 : i32
    %c0_i32_0 = arith.constant 0 : i32
    return %arg0, %c0_i32 : i32, i32
  }
  func.func @transform_1(%arg0: i32) -> (i32, i32) {
    %c0_i32 = arith.constant 0 : i32
    %c0_i32_0 = arith.constant 0 : i32
    %c0_i32_1 = arith.constant 0 : i32
    return %c0_i32, %c0_i32_0 : i32, i32
  }
  func.func @transform_2(%arg0: i32) -> (i32, i32) {
    %c0_i32 = arith.constant 0 : i32
    %c0_i32_0 = arith.constant 0 : i32
    %c0_i32_1 = arith.constant 0 : i32
    return %c0_i32, %c0_i32_0 : i32, i32
  }
  func.func @transform_3(%arg0: i32) -> (i32, i32) {
    %c0_i32 = arith.constant 0 : i32
    %c0_i32_0 = arith.constant 0 : i32
    %c0_i32_1 = arith.constant 0 : i32
    return %c0_i32, %c0_i32_0 : i32, i32
  }
  func.func @transform_4(%arg0: i32) -> (i32, i32) {
    %c0_i32 = arith.constant 0 : i32
    %c0_i32_0 = arith.constant 0 : i32
    %c0_i32_1 = arith.constant 0 : i32
    return %c0_i32, %c0_i32_0 : i32, i32
  }
  func.func @transform_5(%arg0: i32) -> (i32, i32) {
    %c0_i32 = arith.constant 0 : i32
    %c0_i32_0 = arith.constant 0 : i32
    %c0_i32_1 = arith.constant 0 : i32
    return %c0_i32, %c0_i32_0 : i32, i32
  }
  func.func @transform_6(%arg0: i32) -> (i32, i32) {
    %c0_i32 = arith.constant 0 : i32
    %c0_i32_0 = arith.constant 0 : i32
    %c0_i32_1 = arith.constant 0 : i32
    return %c0_i32, %c0_i32_0 : i32, i32
  }
  func.func @transform_7(%arg0: i32) -> (i32, i32) {
    %c0_i32 = arith.constant 0 : i32
    %c0_i32_0 = arith.constant 0 : i32
    %c0_i32_1 = arith.constant 0 : i32
    return %c0_i32, %c0_i32_0 : i32, i32
  }
  func.func @transform_8(%arg0: i32) -> (i32, i32) {
    %c0_i32 = arith.constant 0 : i32
    %c0_i32_0 = arith.constant 0 : i32
    %c0_i32_1 = arith.constant 0 : i32
    return %c0_i32, %c0_i32_0 : i32, i32
  }
  func.func @transform_9(%arg0: i32) -> (i32, i32) {
    %c0_i32 = arith.constant 0 : i32
    %c0_i32_0 = arith.constant 0 : i32
    return %arg0, %c0_i32 : i32, i32
  }
}

</mosaic_0001>

<bundles_post_ra>
// kernel: tpu_custom_call.1
= control target key start
LH: loop header
LB: loop body
LE: loop exit
PB: predicated region body
PF: predicated region fallthrough
CT: control target
= control target key end

     0   :  { %s2543_s0 = inlined_call_operand.hbm [shape: bf16[304,128], index: 0, kind: input, shape index: {}]   ;;  %s2544_s1 = inlined_call_operand.hbm [shape: bf16[128,128], index: 1, kind: input, shape index: {}]   ;;  %s2545_s2 = inlined_call_operand.vmem [shape: f32[1,128], index: 2, kind: input, shape index: {}]   ;;  %s2546_s3 = inlined_call_operand.hbm [shape: bf16[128,128], index: 3, kind: input, shape index: {}]   ;;  %s2547_s4 = inlined_call_operand.vmem [shape: f32[1,128], index: 4, kind: input, shape index: {}]   ;;  %s2548_s5 = inlined_call_operand.hbm [shape: bf16[128,128], index: 5, kind: input, shape index: {}]   ;;  %s2549_s6 = inlined_call_operand.vmem [shape: f32[1,128], index: 6, kind: input, shape index: {}]   ;;  %s2550_s7 = inlined_call_operand.vmem [shape: f32[1,128], index: 7, kind: input, shape index: {}]   ;;  %s2551_s8 = inlined_call_operand.<no memory space> [shape: f32[1,1], index: 8, kind: input, shape index: {}]   ;;  %s2552_s9 = inlined_call_operand.vmem [shape: f32[304,1], index: 9, kind: output, shape index: {}]  }
   0x1   :  { %v14_v0 = vstv %s2551_s8 }
   0x2   :  { %15 = vst [vmem:[#allocation2] sm:$0x1] %v14_v0 }
   0x3   :  { %16 = vsyncpa [#allocation4], 0 }
   0x4   :  { %18 = vsyncpa [#allocation4 + $0x1], 0 }
   0x5   :  { %19 = vsyncpa [#allocation6], 0 }
   0x6   :  { %20 = vsyncpa [#allocation9], 0  ;;  %s2140_s11 = smov 0   ;;  %s2142_s12 = smov 0  }
   0x7   :  { %s2144_s13 = smov 0   ;;  %s2146_s14 = smov 0  }
   0x8 LB: > { %s2555_s8 = sadd.s32 4294967295, %s2079_s14   ;;  %p46_p0 = scmp.ne.s32.totalorder %s2071_s12, %s2067_s11  ;;  %s2079_s14 = sphi %s2146_s14, %s2573_s14   ;;  %s2075_s13 = sphi %s2144_s13, %s2572_s13   ;;  %s2071_s12 = sphi %s2142_s12, %s2571_s12   ;;  %s2067_s11 = sphi %s2140_s11, %s2570_s11  }
   0x9   : > { %p2162_p1 = scmp.eq.s32.totalorder %s2555_s8, 0  ;;  %p1429_p2 = scmp.ge.s32.totalorder %s2079_s14, 1 }
   0xa   : > { %p251_p3 = scmp.lt.s32.totalorder %s2079_s14, 3  ;;  %s2081_s18 = smov [#allocation5]  }
   0xb   : > { %s2559_s15 = scalar_select %p2162_p1, 1, 0 }
   0xc   : > { %p2170_p4 = por %p2162_p1, %p46_p0  ;;  %p2174_p5 = pnand %p1429_p2, %p251_p3 }
   0xd   : > { %s263_s19 = sshll.u32 %s2081_s18, 4  ;;  %s2082_s21 = smov [#allocation7]   ;;  %s2178_s19 = int_to_ptr.vmem [resolvable:$true] %s263_s19 }
   0xe   : > { %s2560_s16 = scalar_select %p2170_p4, 1, 0 }
   0xf   : > { %s2561_s17 = scalar_select %p2174_p5, 1, 0 }
  0x10   : > { %p1695_p6 = pneg %p2174_p5  ;;  %s279_s22 = sshll.u32 %s2082_s21, 4  ;;  %s2188_s22 = int_to_ptr.vmem [resolvable:$true] %s279_s22 }
  0x11   : > { %s2083_s23 = smov [#allocation8]   ;;  %s1923_s27 = scalar_lea.hbm %s2544_s1, 1024 }
  0x12   : > { %p2184_p7 = pnand %p1695_p6, %p2162_p1  ;;  %s2190_s24 = sshll.u32 %s2083_s23, 4  ;;  %s296_s24 = int_to_ptr.vmem [resolvable:$true] %s2190_s24 }
  0x13   : > { %p1924_p8 = scmp.ne.s32.totalorder %s2544_s1, %s1923_s27  ;;  %p1930_p12 = scmp.lt.u32.totalorder %s1923_s27, %s2544_s1 }
  0x14   : > { %p2200_p9 = pneg %p2184_p7 }
  0x16   : > { %p1926_p10 = pnand %p2200_p9, %p1924_p8 }
  0x18   : > { %p1927_p11 = pneg %p1926_p10 }
  0x1a   : > { %p1932_p13 = pnand %p1930_p12, %p1927_p11 }
  0x1c   : > { %1935 = shalt.err (!%p1932_p13)
}
  0x1d   : > { %s1936_s18 = scalar_lea.vmem %s2178_s19, 1024  ;;  %p1944_p6 = scmp.lt.s32.totalorder %s2178_s19, %s2178_s19 }
  0x1e   : > { %p1937_p0 = scmp.ne.s32.totalorder %s2178_s19, %s1936_s18  ;;  %p1945_p1 = scmp.lt.s32.totalorder %s1936_s18, %s1936_s18 }
  0x20   : > { %p1939_p2 = pnand %p1937_p0, %p2200_p9  ;;  %p1946_p8 = por %p1945_p1, %p1944_p6 }
  0x22   : > { %p1940_p3 = pneg %p1939_p2 }
  0x24   : > { %p1947_p10 = pnand %p1946_p8, %p1940_p3 }
  0x26   : > { %1950 = shalt.err (!%p1947_p10)
}
  0x27   : > { %s2558_s21 = smov 64   ;;  %s2085_s23 = smov 4  }
  0x28   : > { %1698 = dma.hbm_to_vmem [thread:$0]  (!%p2184_p7), %s2544_s1, 1024, %s2178_s19, [#allocation6], %s2558_s21, %s2558_s21, %s2085_s23  }
  0x29   : > { %s1951_s29 = scalar_lea.hbm %s2546_s3, 1024 }
  0x2a   : > { %p1952_p1 = scmp.ne.s32.totalorder %s2546_s3, %s1951_s29  ;;  %p1958_p13 = scmp.lt.u32.totalorder %s1951_s29, %s2546_s3 }
  0x2c   : > { %p1954_p11 = pnand %p1952_p1, %p2200_p9 }
  0x2e   : > { %p1955_p12 = pneg %p1954_p11 }
  0x30   : > { %p1960_p0 = pnand %p1958_p13, %p1955_p12 }
  0x32   : > { %1963 = shalt.err (!%p1960_p0)
}
  0x33   : > { %s1964_s19 = scalar_lea.vmem %s2188_s22, 1024  ;;  %p1972_p8 = scmp.lt.s32.totalorder %s2188_s22, %s2188_s22 }
  0x34   : > { %p1965_p2 = scmp.ne.s32.totalorder %s2188_s22, %s1964_s19  ;;  %p1973_p10 = scmp.lt.s32.totalorder %s1964_s19, %s1964_s19 }
  0x36   : > { %p1967_p3 = pnand %p1965_p2, %p2200_p9  ;;  %p1974_p1 = por %p1973_p10, %p1972_p8 }
  0x38   : > { %p1968_p6 = pneg %p1967_p3 }
  0x3a   : > { %p1975_p11 = pnand %p1974_p1, %p1968_p6 }
  0x3c   : > { %1978 = shalt.err (!%p1975_p11)
}
  0x3d   : > { %1701 = dma.hbm_to_vmem [thread:$0]  (!%p2184_p7), %s2546_s3, 1024, %s2188_s22, [#allocation6], %s2558_s21, %s2558_s21, %s2085_s23  }
  0x3e   : > { %s1979_s28 = scalar_lea.hbm %s2548_s5, 1024 }
  0x3f   : > { %p1980_p12 = scmp.ne.s32.totalorder %s2548_s5, %s1979_s28  ;;  %p1986_p2 = scmp.lt.u32.totalorder %s1979_s28, %s2548_s5 }
  0x41   : > { %p1982_p13 = pnand %p1980_p12, %p2200_p9 }
  0x43   : > { %p1983_p0 = pneg %p1982_p13 }
  0x45   : > { %p1988_p3 = pnand %p1986_p2, %p1983_p0 }
  0x47   : > { %1991 = shalt.err (!%p1988_p3)
}
  0x48   : > { %s1992_s19 = scalar_lea.vmem %s296_s24, 1024  ;;  %p2000_p1 = scmp.lt.s32.totalorder %s296_s24, %s296_s24 }
  0x49   : > { %p1993_p6 = scmp.ne.s32.totalorder %s296_s24, %s1992_s19  ;;  %p2001_p11 = scmp.lt.s32.totalorder %s1992_s19, %s1992_s19 }
  0x4b   : > { %p1995_p8 = pnand %p1993_p6, %p2200_p9  ;;  %p2002_p4 = por %p2001_p11, %p2000_p1 }
  0x4d   : > { %p1996_p10 = pneg %p1995_p8 }
  0x4f   : > { %p2003_p5 = pnand %p2002_p4, %p1996_p10 }
  0x51   : > { %2006 = shalt.err (!%p2003_p5)
}
  0x52   : > { %1704 = dma.hbm_to_vmem [thread:$0]  (!%p2184_p7), %s2548_s5, 1024, %s296_s24, [#allocation9], %s2558_s21, %s2558_s21, %s2085_s23  }
  0x53   : > { %s2273_s30 = sadd.s32 1, %s2079_s14   ;;  %s33_s25 = sadd.s32 1, %s2075_s13 }
  0x54   : > { %s30_s20 = ssub.s32 %s2079_s14, %s2273_s30  ;;  %p40_p5 = scmp.ne.s32.totalorder %s2075_s13, %s2071_s12 }
  0x55   : > { %p31_p4 = scmp.eq.s32.totalorder %s30_s20, 0  ;;  %p41_p9 = scmp.eq.s32.totalorder %s2079_s14, 0 }
  0x56   : > { %p1712_p12 = scmp.lt.s32.totalorder %s2079_s14, 2  ;;  %s318_s27 = sand.u32 1, %s2075_s13  }
  0x57   : > { %s2283_s26 = scalar_select %p31_p4, %s2075_s13, %s33_s25  }
  0x58   : > { %p42_p13 = por %p41_p9, %p40_p5  ;;  %s1679_s28 = smul.u32 76, %s318_s27 }
  0x59   : > { %s1500_s29 = smul.u32 1216, %s2079_s14  ;;  %s2298_s8 = scalar_lea.sflag [#allocation4], %s318_s27 }
  0x5a   : > { %p2287_p0 = pnand %p1712_p12, %p42_p13  ;;  %s322_s19 = scalar_lea.vmem [#allocation3], %s1679_s28 }
  0x5b   : > { %s2294_s18 = scalar_lea.hbm %s2543_s0, %s1500_s29  ;;  %s329_s22 = sshll.u32 %s322_s19, 4  ;;  %s2296_s22 = int_to_ptr.vmem [resolvable:$true] %s329_s22 }
  0x5c   : > { %s2007_s20 = scalar_lea.hbm %s2294_s18, 1216  ;;  %p2009_p2 = pneg %p2287_p0 }
  0x5d   : > { %p2008_p7 = scmp.ne.s32.totalorder %s2294_s18, %s2007_s20  ;;  %s2012_s24 = scalar_lea.hbm %s2543_s0, 2432 }
  0x5e   : > { %p2013_p8 = scmp.lt.u32.totalorder %s2294_s18, %s2543_s0  ;;  %p2014_p10 = scmp.lt.u32.totalorder %s2012_s24, %s2007_s20 }
  0x5f   : > { %p2010_p3 = pnand %p2009_p2, %p2008_p7  ;;  %p2016_p11 = scmp.lt.u32.totalorder %s2007_s20, %s2294_s18 }
  0x60   : > { %p2015_p1 = por %p2014_p10, %p2013_p8 }
  0x61   : > { %p2011_p6 = pneg %p2010_p3 }
  0x62   : > { %p2017_p4 = por %p2016_p11, %p2015_p1 }
  0x64   : > { %p2018_p5 = pnand %p2017_p4, %p2011_p6 }
  0x66   : > { %2021 = shalt.err (!%p2018_p5)
}
  0x67   : > { %s2022_s27 = scalar_lea.vmem %s2296_s22, 1216  ;;  %s2086_s28 = smov [#allocation3]  }
  0x68   : > { %p2023_p9 = scmp.ne.s32.totalorder %s2296_s22, %s2022_s27  ;;  %s2027_s19 = sshll.u32 %s2086_s28, 4  ;;  %s2028_s19 = int_to_ptr.vmem [resolvable:$false] %s2027_s19 }
  0x69   : > { %s2029_s21 = scalar_lea.vmem %s2028_s19, 2432  ;;  %p2030_p7 = scmp.lt.s32.totalorder %s2296_s22, %s2028_s19 }
  0x6a   : > { %p2025_p12 = pnand %p2023_p9, %p2009_p2  ;;  %p2031_p3 = scmp.lt.s32.totalorder %s2029_s21, %s2022_s27 }
  0x6c   : > { %p2026_p13 = pneg %p2025_p12  ;;  %p2032_p8 = por %p2031_p3, %p2030_p7 }
  0x6e   : > { %p2033_p10 = pnand %p2032_p8, %p2026_p13 }
  0x70   : > { %2036 = shalt.err (!%p2033_p10)
}
  0x71   : > { %s2565_s20 = smov 64   ;;  %p2566_p2 = scmp.ne.s32.totalorder %s2561_s17, 0 }
  0x72   : > { %1708 = dma.hbm_to_vmem [thread:$0]  (!%p2287_p0), %s2294_s18, 1216, %s2296_s22, %s2298_s8, %s2565_s20, %s2565_s20, %s2085_s23  }
  0x73   : > { %341 = sbr.rel (%p2566_p2) target bundleno = 1068 (0x42c), region = 56  ;;  %s343_s25 = sand.u32 (!%p2566_p2), 1, %s2071_s12  }
  0x74   : > { %s1680_s29 = smul.u32 (!%p2566_p2), 76, %s343_s25  ;;  %s344_s24 = scalar_lea.sflag (!%p2566_p2), [#allocation4], %s343_s25 }
  0x75   : > { %p2567_p6 = scmp.ne.s32.totalorder (!%p2566_p2), %s2560_s16, 0 }
  0x76   : > { %s2332_s11 = scalar_lea.vmem (!%p2566_p2), [#allocation3], %s1680_s29 }
  0x7a   : > { %2054 = dma.done.wait (%p2567_p6), %s344_s24, 1216  }
  0x7b   : > { %2056 = vsyncadd (%p2567_p6), %s344_s24, 4294966080  ;;  %p2568_p1 = scmp.ne.s32.totalorder %s2559_s15, 0 }
  0x7d   : > { %2058 = dma.done.wait (%p2568_p1), [#allocation6], 2048  }
  0x7e   : > { %2060 = vsyncadd (%p2568_p1), [#allocation6], 4294965248 }
  0x7f   : > { %2062 = dma.done.wait (%p2568_p1), [#allocation9], 1024  }
  0x80   : > { %2064 = vsyncadd (%p2568_p1), [#allocation9], 4294966272  ;;  %v1753_v1 = vld [vmem:[#allocation5] sm:$0xff]   ;;  %v1754_v2 = vld [vmem:[#allocation5 + $0x8] sm:$0xff]   ;;  %s2569_s27 = sadd.s32 4294967295, %s2079_s14   ;;  %vm1311_vm0 = vcmask 7168  }
  0x81   : > { %1555 = vmatprep.subr.bf16.mxu0 %v1753_v1  ;;  %v1755_v3 = vld [vmem:[#allocation5 + $0x10] sm:$0xff]   ;;  %v1756_v4 = vld [vmem:[#allocation5 + $0x18] sm:$0xff]   ;;  %v1757_v6 = vld [vmem:[#allocation5 + $0x20] sm:$0xff]   ;;  %s395_s28 = smul.u32 19, %s2569_s27 }
  0x82   : > { %1556 = vmatpush3.bf16.msra.mxu0 %v1753_v1  ;;  %v1761_v5 = vld [vmem:[%s2332_s11] sm:$0xff]   ;;  %v1771_v9 = vld [vmem:[#allocation7] sm:$0xff]   ;;  %v1770_v21 = vld [vmem:[%s2332_s11 + $0x48] ss:$0 sps:$4 sm:$0xff]  }
  0x83   : > { %1557 = vmatprep.subr.bf16.mxu0 %v1754_v2  ;;  %1571 = vmatprep.mubr.bf16.mxu0 %v1761_v5  ;;  %v1758_v7 = vld [vmem:[#allocation5 + $0x28] sm:$0xff]   ;;  %v1759_v8 = vld [vmem:[#allocation5 + $0x30] sm:$0xff]   ;;  %v1760_v12 = vld [vmem:[#allocation5 + $0x38] sm:$0xff]   ;;  %p396_p0 = scmp.lt.s32.totalorder %s395_s28, 37 }
  0x84   : > { %v1772_v10 = vld [vmem:[#allocation7 + $0x8] sm:$0xff]   ;;  %1591 = vmatprep.subr.bf16.mxu1 %v1771_v9  ;;  %v1773_v11 = vld [vmem:[#allocation7 + $0x10] sm:$0xff]   ;;  %v1774_v22 = vld [vmem:[#allocation7 + $0x18] sm:$0xff]  }
  0x85   : > { %1592 = vmatpush3.bf16.msra.mxu1 %v1771_v9  ;;  %v1762_v13 = vld [vmem:[%s2332_s11 + $0x8] sm:$0xff]   ;;  %v1763_v14 = vld [vmem:[%s2332_s11 + $0x10] sm:$0xff]   ;;  %v1764_v15 = vld [vmem:[%s2332_s11 + $0x18] sm:$0xff]   ;;  %s2575_s28 = smov (!%p396_p0, %s395_s28), 37 }
  0x86   : > { %1558 = vmatpush3.bf16.msra.mxu0 %v1754_v2  ;;  %1593 = vmatprep.subr.bf16.mxu1 %v1772_v10  ;;  %v1765_v16 = vld [vmem:[%s2332_s11 + $0x20] sm:$0xff]   ;;  %v1766_v17 = vld [vmem:[%s2332_s11 + $0x28] sm:$0xff]   ;;  %v1767_v18 = vld [vmem:[%s2332_s11 + $0x30] sm:$0xff]   ;;  %s1439_s14 = sshll.u32 %s2575_s28, 3 }
  0x87   : > { %1559 = vmatprep.subr.bf16.mxu0 %v1755_v3  ;;  %v1768_v19 = vld [vmem:[%s2332_s11 + $0x38] sm:$0xff]   ;;  %v1769_v20 = vld [vmem:[%s2332_s11 + $0x40] sm:$0xff]   ;;  %s2484_s20 = scalar_lea.vmem %s2552_s9, %s1439_s14 }
  0x88   : > { %v1775_v23 = vld [vmem:[#allocation7 + $0x20] sm:$0xff]   ;;  %v1776_v24 = vld [vmem:[#allocation7 + $0x28] sm:$0xff]   ;;  %v1777_v25 = vld [vmem:[#allocation7 + $0x30] sm:$0xff]  }
  0x89   : > { %1594 = vmatpush3.bf16.msra.mxu1 %v1772_v10  ;;  %v1778_v26 = vld [vmem:[#allocation7 + $0x38] sm:$0xff]   ;;  %v1779_v27 = vld [vmem:[#allocation8] sm:$0xff]   ;;  %v1780_v28 = vld [vmem:[#allocation8 + $0x8] sm:$0xff]  }
  0x8a   : > { %1560 = vmatpush3.bf16.msra.mxu0 %v1755_v3  ;;  %1595 = vmatprep.subr.bf16.mxu1 %v1773_v11  ;;  %v2356_v29 = vld [vmem:[#allocation8 + $0x10] sm:$0xff]   ;;  %v2359_v30 = vld [vmem:[#allocation8 + $0x18] sm:$0xff]   ;;  %v2367_v32 = vld [vmem:[%s2545_s2] ss:$0 sm:$0xff] }
  0x8b   : > { %1561 = vmatprep.subr.bf16.mxu0 %v1756_v4 }
  0x8d   : > { %1596 = vmatpush3.bf16.msra.mxu1 %v1773_v11 }
  0x8e   : > { %1562 = vmatpush3.bf16.msra.mxu0 %v1756_v4  ;;  %1597 = vmatprep.subr.bf16.mxu1 %v1774_v22 }
  0x8f   : > { %1563 = vmatprep.subr.bf16.mxu0 %v1757_v6 }
  0x91   : > { %1598 = vmatpush3.bf16.msra.mxu1 %v1774_v22 }
  0x92   : > { %1564 = vmatpush3.bf16.msra.mxu0 %v1757_v6  ;;  %1599 = vmatprep.subr.bf16.mxu1 %v1775_v23 }
  0x93   : > { %1565 = vmatprep.subr.bf16.mxu0 %v1758_v7 }
  0x95   : > { %1600 = vmatpush3.bf16.msra.mxu1 %v1775_v23 }
  0x96   : > { %1566 = vmatpush3.bf16.msra.mxu0 %v1758_v7  ;;  %1601 = vmatprep.subr.bf16.mxu1 %v1776_v24 }
  0x97   : > { %1567 = vmatprep.subr.bf16.mxu0 %v1759_v8 }
  0x99   : > { %1602 = vmatpush3.bf16.msra.mxu1 %v1776_v24 }
  0x9a   : > { %1568 = vmatpush3.bf16.msra.mxu0 %v1759_v8  ;;  %1603 = vmatprep.subr.bf16.mxu1 %v1777_v25 }
  0x9b   : > { %1569 = vmatprep.subr.bf16.mxu0 %v1760_v12 }
  0x9d   : > { %1604 = vmatpush3.bf16.msra.mxu1 %v1777_v25 }
  0x9e   : > { %1570 = vmatpush3.bf16.msra.mxu0 %v1760_v12  ;;  %1605 = vmatprep.subr.bf16.mxu1 %v1778_v26 }
  0x9f   : > { %1627 = vmatprep.subr.bf16.mxu0 %v1779_v27 }
  0xa1   : > { %1572 = vmatmul.mubr.bf16.vlgmr.msra.gmra.mrb[0].mxu0 %v1762_v13  ;;  %1606 = vmatpush3.bf16.msra.mxu1 %v1778_v26 }
  0xa2   : > { %1575 = vmatprep.mubr.bf16.mxu0 %v1763_v14  ;;  %1663 = vmatprep.subr.bf16.mxu1 %v1779_v27 }
  0xa3   : > { %1628 = vmatpush3.bf16.msra.mxu0 %v1779_v27 }
  0xa4   : > { %1629 = vmatprep.subr.bf16.mxu0 %v1780_v28 }
  0xa7   : > { %1630 = vmatpush3.bf16.msra.mxu0 %v1780_v28 }
  0xa8   : > { %1631 = vmatprep.subr.bf16.mxu0 %v2356_v29 }
  0xa9   : > { %1576 = vmatmul.mubr.bf16.gmra.mrb[4].mxu0 %v1764_v15 }
  0xaa   : > { %1579 = vmatprep.mubr.bf16.mxu0 %v1765_v16 }
  0xab   : > { %1632 = vmatpush3.bf16.msra.mxu0 %v2356_v29 }
  0xac   : > { %1633 = vmatprep.subr.bf16.mxu0 %v2359_v30 }
  0xaf   : > { %1634 = vmatpush3.bf16.msra.mxu0 %v2359_v30 }
  0xb1   : > { %1580 = vmatmul.mubr.bf16.gmra.mrb[8].mxu0 %v1766_v17 }
  0xb2   : > { %1583 = vmatprep.mubr.bf16.mxu0 %v1767_v18 }
  0xb9   : > { %1584 = vmatmul.mubr.bf16.gmra.mrb[12].mxu0 %v1768_v19 }
  0xba   : > { %1587 = vmatprep.mubr.bf16.mxu0 %v1769_v20 }
  0xc1   : > { %1588 = vmatmul.mubr.bf16.gmra.mrb[16].mxu0 %v1770_v21 }
 0x174   : > { %v1573_v31 = vpop.f32.mrb[0].mxu0 }
 0x175   : > { %v584_v33 = vpop.f32.mrb[1].mxu0  ;;  %v593_v35 = vadd.f32 %v1573_v31, %v2367_v32 }
 0x176   : > { %v1574_v34 = vpop.f32.mrb[2].mxu0  ;;  %v585_v38 = vadd.f32 %v2367_v32, %v584_v33 }
 0x177   : > { %v596_v36 = vadd.f32 %v1574_v34, %v2367_v32  ;;  %v587_v37 = vpop.f32.mrb[3].mxu0 }
 0x178   : > { %v588_v39 = vadd.f32 %v2367_v32, %v587_v37 }
 0x179   : > { %v663_v40 = vpack.c.bf16 %v596_v36, %v593_v35 }
 0x17a   : > { %v662_v41 = vpack.c.bf16 %v588_v39, %v585_v38 }
 0x17c   : > { %v1577_v42 = vpop.f32.mrb[4].mxu0  ;;  %1787 = vtanh.bf16 %v662_v41 }
 0x17d   : > { %1789 = vtanh.bf16 %v663_v40  ;;  %v600_v43 = vpop.f32.mrb[5].mxu0  ;;  %v609_v45 = vadd.f32 %v1577_v42, %v2367_v32 }
 0x17e   : > { %v1578_v44 = vpop.f32.mrb[6].mxu0  ;;  %v601_v48 = vadd.f32 %v2367_v32, %v600_v43 }
 0x17f   : > { %v612_v46 = vadd.f32 %v1578_v44, %v2367_v32  ;;  %v603_v47 = vpop.f32.mrb[7].mxu0 }
 0x180   : > { %v604_v49 = vadd.f32 %v2367_v32, %v603_v47 }
 0x181   : > { %v665_v50 = vpack.c.bf16 %v612_v46, %v609_v45 }
 0x182   : > { %v664_v51 = vpack.c.bf16 %v604_v49, %v601_v48 }
 0x184   : > { %1791 = vtanh.bf16 %v664_v51  ;;  %v1581_v52 = vpop.f32.mrb[8].mxu0 }
 0x185   : > { %1793 = vtanh.bf16 %v665_v50  ;;  %v616_v53 = vpop.f32.mrb[9].mxu0  ;;  %v625_v56 = vadd.f32 %v1581_v52, %v2367_v32 }
 0x186   : > { %v1582_v54 = vpop.f32.mrb[10].mxu0  ;;  %v617_v60 = vadd.f32 %v2367_v32, %v616_v53 }
 0x187   : > { %v1788_v55 = vpop.eup %1787  ;;  %v628_v57 = vadd.f32 %v1582_v54, %v2367_v32  ;;  %v619_v58 = vpop.f32.mrb[11].mxu0 }
 0x188   : > { %v1790_v59 = vpop.eup %1789  ;;  %v620_v61 = vadd.f32 %v2367_v32, %v619_v58  ;;  %1607 = vmatprep.mubr.bf16.mxu1 %v1788_v55 }
 0x189   : > { %v667_v62 = vpack.c.bf16 %v628_v57, %v625_v56  ;;  %1608 = vmatmul.mubr.bf16.vlgmr.msra.gmra.mrb[0].mxu1 %v1790_v59 }
 0x18a   : > { %v666_v63 = vpack.c.bf16 %v620_v61, %v617_v60  ;;  %1671 = vmatpush3.bf16.msra.mxu1 %v1779_v27  ;;  %v1783_v27 = vld [vmem:[#allocation8 + $0x20] sm:$0xff]  }
 0x18b   : > { %1664 = vmatprep.subr.bf16.mxu1 %v1780_v28  ;;  %1635 = vmatprep.subr.bf16.mxu0 %v1783_v27 }
 0x18c   : > { %1795 = vtanh.bf16 %v666_v63  ;;  %v1585_v0 = vpop.f32.mrb[12].mxu0  ;;  %1636 = vmatpush3.bf16.msra.mxu0 %v1783_v27 }
 0x18d   : > { %1797 = vtanh.bf16 %v667_v62  ;;  %v632_v1 = vpop.f32.mrb[13].mxu0  ;;  %v641_v4 = vadd.f32 %v1585_v0, %v2367_v32 }
 0x18e   : > { %v1586_v2 = vpop.f32.mrb[14].mxu0  ;;  %1672 = vmatpush3.bf16.msra.mxu1 %v1780_v28  ;;  %v633_v8 = vadd.f32 %v2367_v32, %v632_v1  ;;  %v1784_v28 = vld [vmem:[#allocation8 + $0x28] sm:$0xff]  }
 0x18f   : > { %v1792_v3 = vpop.eup %1791  ;;  %v644_v5 = vadd.f32 %v1586_v2, %v2367_v32  ;;  %v635_v6 = vpop.f32.mrb[15].mxu0  ;;  %1665 = vmatprep.subr.bf16.mxu1 %v2356_v29  ;;  %1637 = vmatprep.subr.bf16.mxu0 %v1784_v28 }
 0x190   : > { %v1794_v7 = vpop.eup %1793  ;;  %v636_v9 = vadd.f32 %v2367_v32, %v635_v6  ;;  %1611 = vmatprep.mubr.bf16.mxu1 %v1792_v3  ;;  %1638 = vmatpush3.bf16.msra.mxu0 %v1784_v28 }
 0x191   : > { %v669_v10 = vpack.c.bf16 %v644_v5, %v641_v4  ;;  %1612 = vmatmul.mubr.bf16.gmra.mrb[4].mxu1 %v1794_v7 }
 0x192   : > { %v668_v11 = vpack.c.bf16 %v636_v9, %v633_v8  ;;  %1673 = vmatpush3.bf16.msra.mxu1 %v2356_v29  ;;  %v1785_v29 = vld [vmem:[#allocation8 + $0x30] sm:$0xff]  }
 0x193   : > { %1666 = vmatprep.subr.bf16.mxu1 %v2359_v30  ;;  %1639 = vmatprep.subr.bf16.mxu0 %v1785_v29 }
 0x194   : > { %1799 = vtanh.bf16 %v668_v11  ;;  %v1589_v12 = vpop.f32.mrb[16].mxu0  ;;  %1640 = vmatpush3.bf16.msra.mxu0 %v1785_v29 }
 0x195   : > { %1801 = vtanh.bf16 %v669_v10  ;;  %v657_v13 = vadd.f32 %v1589_v12, %v2367_v32  ;;  %v648_v14 = vpop.f32.mrb[17].mxu0 }
 0x196   : > { %v1590_v15 = vpop.f32.mrb[18].mxu0  ;;  %1674 = vmatpush3.bf16.msra.mxu1 %v2359_v30  ;;  %v649_v19 = vadd.f32 %v2367_v32, %v648_v14  ;;  %v1786_v30 = vld [vmem:[#allocation8 + $0x38] sm:$0xff]  }
 0x197   : > { %v1796_v16 = vpop.eup %1795  ;;  %v651_v17 = vpop.f32.mrb[19].mxu0  ;;  %v671_v21 = vpack.c.bf16 %v657_v13, %v657_v13  ;;  %1667 = vmatprep.subr.bf16.mxu1 %v1783_v27  ;;  %1641 = vmatprep.subr.bf16.mxu0 %v1786_v30 }
 0x198   : > { %v1798_v18 = vpop.eup %1797  ;;  %v652_v20 = vadd.f32 %v2367_v32, %v651_v17  ;;  %1615 = vmatprep.mubr.bf16.mxu1 %v1796_v16  ;;  %1642 = vmatpush3.bf16.msra.mxu0 %v1786_v30  ;;  %v2395_v32 = vld [vmem:[%s2547_s4] ss:$0 sm:$0xff] }
 0x199   : > { %1616 = vmatmul.mubr.bf16.gmra.mrb[8].mxu1 %v1798_v18 }
 0x19a   : > { %v670_v22 = vpack.c.bf16 %v652_v20, %v649_v19  ;;  %1675 = vmatpush3.bf16.msra.mxu1 %v1783_v27 }
 0x19b   : > { %1668 = vmatprep.subr.bf16.mxu1 %v1784_v28 }
 0x19c   : > { %1803 = vtanh.bf16 %v670_v22 }
 0x19d   : > { %1805 = vtanh.bf16 %v671_v21 }
 0x19e   : > { %1676 = vmatpush3.bf16.msra.mxu1 %v1784_v28  ;;  %v2419_v28 = vld [vmem:[%s2549_s6] ss:$0 sm:$0xff] }
 0x19f   : > { %v1800_v23 = vpop.eup %1799  ;;  %1669 = vmatprep.subr.bf16.mxu1 %v1785_v29 }
 0x1a0   : > { %v1802_v24 = vpop.eup %1801  ;;  %1619 = vmatprep.mubr.bf16.mxu1 %v1800_v23 }
 0x1a1   : > { %1620 = vmatmul.mubr.bf16.gmra.mrb[12].mxu1 %v1802_v24 }
 0x1a2   : > { %1677 = vmatpush3.bf16.msra.mxu1 %v1785_v29 }
 0x1a3   : > { %1670 = vmatprep.subr.bf16.mxu1 %v1786_v30 }
 0x1a6   : > { %1678 = vmatpush3.bf16.msra.mxu1 %v1786_v30 }
 0x1a7   : > { %v1804_v25 = vpop.eup %1803 }
 0x1a8   : > { %v1806_v26 = vpop.eup %1805  ;;  %1623 = vmatprep.mubr.bf16.mxu1 %v1804_v25 }
 0x1a9   : > { %1624 = vmatmul.mubr.bf16.gmra.mrb[16].mxu1 %v1806_v26 }
 0x25c   : > { %v1609_v31 = vpop.f32.mrb[0].mxu1 }
 0x25d   : > { %v787_v33 = vpop.f32.mrb[1].mxu1  ;;  %v796_v35 = vadd.f32 %v1609_v31, %v2395_v32 }
 0x25e   : > { %v1610_v34 = vpop.f32.mrb[2].mxu1  ;;  %v788_v38 = vadd.f32 %v2395_v32, %v787_v33 }
 0x25f   : > { %v799_v36 = vadd.f32 %v1610_v34, %v2395_v32  ;;  %v790_v37 = vpop.f32.mrb[3].mxu1 }
 0x260   : > { %v791_v39 = vadd.f32 %v2395_v32, %v790_v37 }
 0x261   : > { %v866_v40 = vpack.c.bf16 %v799_v36, %v796_v35 }
 0x262   : > { %v865_v41 = vpack.c.bf16 %v791_v39, %v788_v38 }
 0x264   : > { %1807 = vtanh.bf16 %v865_v41  ;;  %v1613_v42 = vpop.f32.mrb[4].mxu1 }
 0x265   : > { %1809 = vtanh.bf16 %v866_v40  ;;  %v803_v43 = vpop.f32.mrb[5].mxu1  ;;  %v812_v45 = vadd.f32 %v1613_v42, %v2395_v32 }
 0x266   : > { %v1614_v44 = vpop.f32.mrb[6].mxu1  ;;  %v804_v48 = vadd.f32 %v2395_v32, %v803_v43 }
 0x267   : > { %v815_v46 = vadd.f32 %v1614_v44, %v2395_v32  ;;  %v806_v47 = vpop.f32.mrb[7].mxu1 }
 0x268   : > { %v807_v49 = vadd.f32 %v2395_v32, %v806_v47 }
 0x269   : > { %v868_v50 = vpack.c.bf16 %v815_v46, %v812_v45 }
 0x26a   : > { %v867_v51 = vpack.c.bf16 %v807_v49, %v804_v48 }
 0x26c   : > { %1811 = vtanh.bf16 %v867_v51  ;;  %v1617_v52 = vpop.f32.mrb[8].mxu1 }
 0x26d   : > { %1813 = vtanh.bf16 %v868_v50  ;;  %v819_v53 = vpop.f32.mrb[9].mxu1  ;;  %v828_v56 = vadd.f32 %v1617_v52, %v2395_v32  ;;  %v2432_v52 = vld [vmem:[%s2550_s7] ss:$0 sm:$0xff] }
 0x26e   : > { %v1618_v54 = vpop.f32.mrb[10].mxu1  ;;  %v820_v60 = vadd.f32 %v2395_v32, %v819_v53 }
 0x26f   : > { %v1808_v55 = vpop.eup %1807  ;;  %v831_v57 = vadd.f32 %v1618_v54, %v2395_v32  ;;  %v822_v58 = vpop.f32.mrb[11].mxu1 }
 0x270   : > { %v1810_v59 = vpop.eup %1809  ;;  %v823_v61 = vadd.f32 %v2395_v32, %v822_v58  ;;  %1643 = vmatprep.mubr.bf16.mxu0 %v1808_v55 }
 0x271   : > { %v870_v62 = vpack.c.bf16 %v831_v57, %v828_v56  ;;  %1644 = vmatmul.mubr.bf16.vlgmr.msra.gmra.mrb[20].mxu0 %v1810_v59 }
 0x272   : > { %v869_v63 = vpack.c.bf16 %v823_v61, %v820_v60 }
 0x274   : > { %1815 = vtanh.bf16 %v869_v63  ;;  %v1621_v0 = vpop.f32.mrb[12].mxu1 }
 0x275   : > { %1817 = vtanh.bf16 %v870_v62  ;;  %v835_v1 = vpop.f32.mrb[13].mxu1  ;;  %v844_v4 = vadd.f32 %v1621_v0, %v2395_v32 }
 0x276   : > { %v1622_v2 = vpop.f32.mrb[14].mxu1  ;;  %v836_v8 = vadd.f32 %v2395_v32, %v835_v1 }
 0x277   : > { %v1812_v3 = vpop.eup %1811  ;;  %v847_v5 = vadd.f32 %v1622_v2, %v2395_v32  ;;  %v838_v6 = vpop.f32.mrb[15].mxu1 }
 0x278   : > { %v1814_v7 = vpop.eup %1813  ;;  %v839_v9 = vadd.f32 %v2395_v32, %v838_v6  ;;  %1647 = vmatprep.mubr.bf16.mxu0 %v1812_v3 }
 0x279   : > { %v872_v10 = vpack.c.bf16 %v847_v5, %v844_v4  ;;  %1648 = vmatmul.mubr.bf16.gmra.mrb[24].mxu0 %v1814_v7 }
 0x27a   : > { %v871_v11 = vpack.c.bf16 %v839_v9, %v836_v8 }
 0x27c   : > { %1819 = vtanh.bf16 %v871_v11  ;;  %v1625_v12 = vpop.f32.mrb[16].mxu1 }
 0x27d   : > { %1821 = vtanh.bf16 %v872_v10  ;;  %v860_v13 = vadd.f32 %v1625_v12, %v2395_v32  ;;  %v851_v14 = vpop.f32.mrb[17].mxu1 }
 0x27e   : > { %v1626_v15 = vpop.f32.mrb[18].mxu1  ;;  %v852_v19 = vadd.f32 %v2395_v32, %v851_v14 }
 0x27f   : > { %v1816_v16 = vpop.eup %1815  ;;  %v854_v17 = vpop.f32.mrb[19].mxu1  ;;  %v874_v21 = vpack.c.bf16 %v860_v13, %v860_v13 }
 0x280   : > { %v1818_v18 = vpop.eup %1817  ;;  %v855_v20 = vadd.f32 %v2395_v32, %v854_v17  ;;  %1651 = vmatprep.mubr.bf16.mxu0 %v1816_v16 }
 0x281   : > { %1652 = vmatmul.mubr.bf16.gmra.mrb[28].mxu0 %v1818_v18 }
 0x282   : > { %v873_v22 = vpack.c.bf16 %v855_v20, %v852_v19 }
 0x284   : > { %1823 = vtanh.bf16 %v873_v22 }
 0x285   : > { %1825 = vtanh.bf16 %v874_v21 }
 0x287   : > { %v1820_v23 = vpop.eup %1819 }
 0x288   : > { %v1822_v24 = vpop.eup %1821  ;;  %1655 = vmatprep.mubr.bf16.mxu1 %v1820_v23 }
 0x289   : > { %1656 = vmatmul.mubr.bf16.vlgmr.msra.gmra.mrb[20].mxu1 %v1822_v24 }
 0x28f   : > { %v1824_v25 = vpop.eup %1823 }
 0x290   : > { %v1826_v26 = vpop.eup %1825  ;;  %1659 = vmatprep.mubr.bf16.mxu1 %v1824_v25 }
 0x291   : > { %1660 = vmatmul.mubr.bf16.gmra.mrb[24].mxu1 %v1826_v26 }
 0x344   : > { %v1645_v27 = vpop.f32.mrb[20].mxu0 }
 0x345   : > { %v990_v29 = vpop.f32.mrb[21].mxu0  ;;  %v999_v31 = vadd.f32 %v1645_v27, %v2419_v28 }
 0x346   : > { %v1646_v30 = vpop.f32.mrb[22].mxu0  ;;  %v991_v34 = vadd.f32 %v2419_v28, %v990_v29 }
 0x347   : > { %v1002_v32 = vadd.f32 %v1646_v30, %v2419_v28  ;;  %v993_v33 = vpop.f32.mrb[23].mxu0 }
 0x348   : > { %v994_v35 = vadd.f32 %v2419_v28, %v993_v33 }
 0x349   : > { %v1069_v36 = vpack.c.bf16 %v1002_v32, %v999_v31 }
 0x34a   : > { %v1068_v37 = vpack.c.bf16 %v994_v35, %v991_v34 }
 0x34b   : > { %1827 = vtanh.bf16 %v1069_v36 }
 0x34c   : > { %1829 = vtanh.bf16 %v1068_v37  ;;  %v1649_v38 = vpop.f32.mrb[24].mxu0 }
 0x34d   : > { %v1006_v39 = vpop.f32.mrb[25].mxu0  ;;  %v1015_v41 = vadd.f32 %v1649_v38, %v2419_v28 }
 0x34e   : > { %v1650_v40 = vpop.f32.mrb[26].mxu0  ;;  %v1007_v44 = vadd.f32 %v2419_v28, %v1006_v39 }
 0x34f   : > { %v1018_v42 = vadd.f32 %v1650_v40, %v2419_v28  ;;  %v1009_v43 = vpop.f32.mrb[27].mxu0 }
 0x350   : > { %v1010_v45 = vadd.f32 %v2419_v28, %v1009_v43 }
 0x351   : > { %v1071_v46 = vpack.c.bf16 %v1018_v42, %v1015_v41 }
 0x352   : > { %v1070_v47 = vpack.c.bf16 %v1010_v45, %v1007_v44 }
 0x353   : > { %1831 = vtanh.bf16 %v1071_v46 }
 0x354   : > { %1833 = vtanh.bf16 %v1070_v47  ;;  %v1653_v48 = vpop.f32.mrb[28].mxu0 }
 0x355   : > { %v1022_v49 = vpop.f32.mrb[29].mxu0  ;;  %v1031_v54 = vadd.f32 %v1653_v48, %v2419_v28 }
 0x356   : > { %v1828_v50 = vpop.eup %1827  ;;  %v1654_v51 = vpop.f32.mrb[30].mxu0  ;;  %v1023_v58 = vadd.f32 %v2419_v28, %v1022_v49 }
 0x357   : > { %v1830_v53 = vpop.eup %1829  ;;  %v1034_v55 = vadd.f32 %v1654_v51, %v2419_v28  ;;  %v1025_v56 = vpop.f32.mrb[31].mxu0  ;;  %v1092_v57 = vunpack.c.l.bf16 %v1828_v50  ;;  %v1093_v63 = vunpack.c.h.bf16 %v1828_v50 }
 0x358   : > { %v1026_v59 = vadd.f32 %v2419_v28, %v1025_v56  ;;  %v1090_v60 = vunpack.c.l.bf16 %v1830_v53  ;;  %v1091_v2 = vunpack.c.h.bf16 %v1830_v53 }
 0x359   : > { %v1073_v61 = vpack.c.bf16 %v1034_v55, %v1031_v54  ;;  %v1117_v62 = vmul.f32 %v2432_v52, %v1092_v57  ;;  %v1118_v5 = vmul.f32 %v2432_v52, %v1093_v63  ;;  %v2464_v63 = vld [vmem:[#allocation2] ss:$0 sm:$0xff] }
 0x35a   : > { %v1072_v0 = vpack.c.bf16 %v1026_v59, %v1023_v58  ;;  %v1115_v1 = vmul.f32 %v2432_v52, %v1090_v60  ;;  %v1116_v8 = vmul.f32 %v2432_v52, %v1091_v2 }
 0x35b   : > { %1835 = vtanh.bf16 %v1073_v61  ;;  %1138 = vadd.xlane.f32.xlu1 %v1117_v62 }
 0x35c   : > { %1837 = vtanh.bf16 %v1072_v0  ;;  %v1657_v3 = vpop.f32.mrb[20].mxu1  ;;  %1134 = vadd.xlane.f32.xlu0 %v1115_v1 }
 0x35d   : > { %v1038_v4 = vpop.f32.mrb[21].mxu1  ;;  %v1047_v10 = vadd.f32 %v1657_v3, %v2419_v28 }
 0x35e   : > { %v1832_v6 = vpop.eup %1831  ;;  %v1658_v7 = vpop.f32.mrb[22].mxu1  ;;  %v1039_v15 = vadd.f32 %v2419_v28, %v1038_v4 }
 0x35f   : > { %v1834_v9 = vpop.eup %1833  ;;  %v1050_v11 = vadd.f32 %v1658_v7, %v2419_v28  ;;  %v1041_v12 = vpop.f32.mrb[23].mxu1  ;;  %1140 = vadd.xlane.f32.xlu1 %v1118_v5  ;;  %v1097_v13 = vunpack.c.h.bf16 %v1832_v6  ;;  %v1096_v14 = vunpack.c.l.bf16 %v1832_v6 }
 0x360   : > { %v1042_v16 = vadd.f32 %v2419_v28, %v1041_v12  ;;  %1136 = vadd.xlane.f32.xlu0 %v1116_v8  ;;  %v1095_v20 = vunpack.c.h.bf16 %v1834_v9  ;;  %v1094_v22 = vunpack.c.l.bf16 %v1834_v9 }
 0x361   : > { %v1075_v17 = vpack.c.bf16 %v1050_v11, %v1047_v10  ;;  %v1122_v18 = vmul.f32 %v2432_v52, %v1097_v13  ;;  %v1121_v19 = vmul.f32 %v2432_v52, %v1096_v14 }
 0x362   : > { %v1074_v21 = vpack.c.bf16 %v1042_v16, %v1039_v15  ;;  %v1120_v26 = vmul.f32 %v2432_v52, %v1095_v20  ;;  %v1119_v30 = vmul.f32 %v2432_v52, %v1094_v22 }
 0x363   : > { %1839 = vtanh.bf16 %v1075_v17  ;;  %1148 = vadd.xlane.f32.xlu1 %v1122_v18 }
 0x364   : > { %1841 = vtanh.bf16 %v1074_v21  ;;  %v1661_v23 = vpop.f32.mrb[24].mxu1  ;;  %1146 = vadd.xlane.f32.xlu0 %v1121_v19 }
 0x365   : > { %v1063_v24 = vadd.f32 %v1661_v23, %v2419_v28  ;;  %v1054_v25 = vpop.f32.mrb[25].mxu1 }
 0x366   : > { %v1836_v27 = vpop.eup %1835  ;;  %v1662_v29 = vpop.f32.mrb[26].mxu1  ;;  %v1055_v36 = vadd.f32 %v2419_v28, %v1054_v25 }
 0x367   : > { %v1838_v31 = vpop.eup %1837  ;;  %v1077_v32 = vpack.c.bf16 %v1063_v24, %v1063_v24  ;;  %v1057_v33 = vpop.f32.mrb[27].mxu1  ;;  %1144 = vadd.xlane.f32.xlu1 %v1120_v26  ;;  %v1101_v34 = vunpack.c.h.bf16 %v1836_v27  ;;  %v1100_v35 = vunpack.c.l.bf16 %v1836_v27 }
 0x368   : > { %v1058_v37 = vadd.f32 %v2419_v28, %v1057_v33  ;;  %1142 = vadd.xlane.f32.xlu0 %v1119_v30  ;;  %v1099_v40 = vunpack.c.h.bf16 %v1838_v31  ;;  %v1098_v42 = vunpack.c.l.bf16 %v1838_v31 }
 0x369   : > { %v1126_v38 = vmul.f32 %v2432_v52, %v1101_v34  ;;  %v1125_v39 = vmul.f32 %v2432_v52, %v1100_v35  ;;  %1843 = vtanh.bf16 %v1077_v32 }
 0x36a   : > { %v1076_v41 = vpack.c.bf16 %v1058_v37, %v1055_v36  ;;  %v1124_v43 = vmul.f32 %v2432_v52, %v1099_v40  ;;  %v1123_v45 = vmul.f32 %v2432_v52, %v1098_v42 }
 0x36b   : > { %1156 = vadd.xlane.f32.xlu1 %v1126_v38 }
 0x36c   : > { %1845 = vtanh.bf16 %v1076_v41  ;;  %1154 = vadd.xlane.f32.xlu0 %v1125_v39 }
 0x36e   : > { %v1840_v44 = vpop.eup %1839 }
 0x36f   : > { %v1842_v46 = vpop.eup %1841  ;;  %1152 = vadd.xlane.f32.xlu1 %v1124_v43  ;;  %v1105_v28 = vunpack.c.h.bf16 %v1840_v44  ;;  %v1104_v47 = vunpack.c.l.bf16 %v1840_v44 }
 0x370   : > { %1150 = vadd.xlane.f32.xlu0 %v1123_v45  ;;  %v1103_v50 = vunpack.c.h.bf16 %v1842_v46  ;;  %v1102_v51 = vunpack.c.l.bf16 %v1842_v46 }
 0x371   : > { %v1130_v48 = vmul.f32 %v2432_v52, %v1105_v28  ;;  %v1129_v49 = vmul.f32 %v2432_v52, %v1104_v47 }
 0x372   : > { %v1128_v53 = vmul.f32 %v2432_v52, %v1103_v50  ;;  %v1127_v55 = vmul.f32 %v2432_v52, %v1102_v51 }
 0x373   : > { %1164 = vadd.xlane.f32.xlu1 %v1130_v48 }
 0x374   : > { %1162 = vadd.xlane.f32.xlu0 %v1129_v49  ;;  %v1844_v54 = vpop.eup %1843 }
 0x375   : > { %v1108_v61 = vunpack.c.l.bf16 %v1844_v54 }
 0x377   : > { %v1846_v56 = vpop.eup %1845  ;;  %1160 = vadd.xlane.f32.xlu1 %v1128_v53  ;;  %v1133_v62 = vmul.f32 %v2432_v52, %v1108_v61 }
 0x378   : > { %1158 = vadd.xlane.f32.xlu0 %v1127_v55  ;;  %v1107_v57 = vunpack.c.h.bf16 %v1846_v56  ;;  %v1106_v58 = vunpack.c.l.bf16 %v1846_v56 }
 0x37a   : > { %v1132_v59 = vmul.f32 %v2432_v52, %v1107_v57  ;;  %v1131_v60 = vmul.f32 %v2432_v52, %v1106_v58 }
 0x37c   : > { %1168 = vadd.xlane.f32.xlu1 %v1132_v59  ;;  %1166 = vadd.xlane.f32.xlu0 %v1131_v60 }
 0x380   : > { %1170 = vadd.xlane.f32.xlu0 %v1133_v62 }
 0x3e8   : > { %v1139_v0 = vpop.xlane.xlu1 %1138 }
 0x3e9   : > { %v1180_v1 = vadd.f32 %v2464_v63, %v1139_v0  ;;  %v1135_v2 = vpop.xlane.xlu0 %1134 }
 0x3ea   : > { %v1178_v3 = vadd.f32 %v2464_v63, %v1135_v2 }
 0x3eb   : > { %v1481_v4 = vmul.f32 -1.442695, %v1180_v1 }
 0x3ec   : > { %v1479_v5 = vmul.f32 -1.442695, %v1178_v3  ;;  %v1141_v6 = vpop.xlane.xlu1 %1140 }
 0x3ed   : > { %1847 = vpow2.f32 %v1481_v4  ;;  %v1181_v7 = vadd.f32 %v2464_v63, %v1141_v6  ;;  %v1137_v8 = vpop.xlane.xlu0 %1136 }
 0x3ee   : > { %1849 = vpow2.f32 %v1479_v5  ;;  %v1179_v52 = vadd.f32 %v2464_v63, %v1137_v8 }
 0x3ef   : > { %v1482_v9 = vmul.f32 -1.442695, %v1181_v7 }
 0x3f0   : > { %v1480_v10 = vmul.f32 -1.442695, %v1179_v52  ;;  %v1149_v11 = vpop.xlane.xlu1 %1148 }
 0x3f1   : > { %1851 = vpow2.f32 %v1482_v9  ;;  %v1185_v12 = vadd.f32 %v2464_v63, %v1149_v11  ;;  %v1147_v13 = vpop.xlane.xlu0 %1146 }
 0x3f2   : > { %1853 = vpow2.f32 %v1480_v10  ;;  %v1184_v14 = vadd.f32 %v2464_v63, %v1147_v13 }
 0x3f3   : > { %v1486_v15 = vmul.f32 -1.442695, %v1185_v12 }
 0x3f4   : > { %v1485_v16 = vmul.f32 -1.442695, %v1184_v14  ;;  %v1145_v17 = vpop.xlane.xlu1 %1144 }
 0x3f5   : > { %1855 = vpow2.f32 %v1486_v15  ;;  %v1183_v18 = vadd.f32 %v2464_v63, %v1145_v17  ;;  %v1143_v19 = vpop.xlane.xlu0 %1142 }
 0x3f6   : > { %1857 = vpow2.f32 %v1485_v16  ;;  %v1182_v20 = vadd.f32 %v2464_v63, %v1143_v19 }
 0x3f7   : > { %v1848_v21 = vpop.eup %1847  ;;  %v1484_v22 = vmul.f32 -1.442695, %v1183_v18 }
 0x3f8   : > { %v1850_v23 = vpop.eup %1849  ;;  %v1256_v24 = vadd.f32 1.0, %v1848_v21  ;;  %v1483_v25 = vmul.f32 -1.442695, %v1182_v20  ;;  %v1157_v26 = vpop.xlane.xlu1 %1156 }
 0x3f9   : > { %v1254_v27 = vadd.f32 1.0, %v1850_v23  ;;  %1859 = vpow2.f32 %v1484_v22  ;;  %v1189_v29 = vadd.f32 %v2464_v63, %v1157_v26  ;;  %v1155_v30 = vpop.xlane.xlu0 %1154 }
 0x3fa   : > { %1861 = vrcp.f32 %v1256_v24  ;;  %v1188_v31 = vadd.f32 %v2464_v63, %v1155_v30 }
 0x3fb   : > { %v1852_v32 = vpop.eup %1851  ;;  %1863 = vrcp.f32 %v1254_v27  ;;  %v1490_v33 = vmul.f32 -1.442695, %v1189_v29 }
 0x3fc   : > { %v1854_v34 = vpop.eup %1853  ;;  %v1257_v35 = vadd.f32 1.0, %v1852_v32  ;;  %1865 = vpow2.f32 %v1483_v25  ;;  %v1489_v36 = vmul.f32 -1.442695, %v1188_v31  ;;  %v1153_v37 = vpop.xlane.xlu1 %1152 }
 0x3fd   : > { %v1255_v38 = vadd.f32 1.0, %v1854_v34  ;;  %1867 = vpow2.f32 %v1490_v33  ;;  %v1187_v39 = vadd.f32 %v2464_v63, %v1153_v37  ;;  %v1151_v40 = vpop.xlane.xlu0 %1150 }
 0x3fe   : > { %1869 = vrcp.f32 %v1257_v35  ;;  %v1186_v41 = vadd.f32 %v2464_v63, %v1151_v40 }
 0x3ff   : > { %v1856_v42 = vpop.eup %1855  ;;  %1871 = vrcp.f32 %v1255_v38  ;;  %v1488_v43 = vmul.f32 -1.442695, %v1187_v39 }
 0x400   : > { %v1858_v44 = vpop.eup %1857  ;;  %v1261_v45 = vadd.f32 1.0, %v1856_v42  ;;  %1873 = vpow2.f32 %v1489_v36  ;;  %v1487_v46 = vmul.f32 -1.442695, %v1186_v41  ;;  %v1165_v28 = vpop.xlane.xlu1 %1164 }
 0x401   : > { %v1260_v47 = vadd.f32 1.0, %v1858_v44  ;;  %1875 = vpow2.f32 %v1488_v43  ;;  %v1193_v48 = vadd.f32 %v2464_v63, %v1165_v28  ;;  %v1163_v49 = vpop.xlane.xlu0 %1162 }
 0x402   : > { %1877 = vrcp.f32 %v1261_v45  ;;  %v1192_v50 = vadd.f32 %v2464_v63, %v1163_v49 }
 0x403   : > { %v1860_v51 = vpop.eup %1859  ;;  %1879 = vrcp.f32 %v1260_v47  ;;  %v1494_v53 = vmul.f32 -1.442695, %v1193_v48 }
 0x404   : > { %v1862_v54 = vpop.eup %1861  ;;  %v1259_v55 = vadd.f32 1.0, %v1860_v51  ;;  %1881 = vpow2.f32 %v1487_v46  ;;  %v1493_v56 = vmul.f32 -1.442695, %v1192_v50  ;;  %v1161_v57 = vpop.xlane.xlu1 %1160 }
 0x405   : > { %v1864_v58 = vpop.eup %1863  ;;  %1314 = vst.msk [vmem:[%s2484_s20 + $0x10] sm:$0xff] %vm1311_vm0, %v1862_v54  ;;  %1883 = vpow2.f32 %v1494_v53  ;;  %v1191_v59 = vadd.f32 %v2464_v63, %v1161_v57  ;;  %v1159_v60 = vpop.xlane.xlu0 %1158 }
 0x406   : > { %v1866_v61 = vpop.eup %1865  ;;  %1312 = vst.msk [vmem:[%s2484_s20] sm:$0xff] %vm1311_vm0, %v1864_v58  ;;  %1885 = vrcp.f32 %v1259_v55  ;;  %v1190_v62 = vadd.f32 %v2464_v63, %v1159_v60 }
 0x407   : > { %v1868_v0 = vpop.eup %1867  ;;  %v1258_v1 = vadd.f32 1.0, %v1866_v61  ;;  %1887 = vpow2.f32 %v1493_v56  ;;  %v1492_v2 = vmul.f32 -1.442695, %v1191_v59 }
 0x408   : > { %v1870_v3 = vpop.eup %1869  ;;  %v1265_v4 = vadd.f32 1.0, %v1868_v0  ;;  %v1491_v5 = vmul.f32 -1.442695, %v1190_v62 }
 0x409   : > { %v1872_v6 = vpop.eup %1871  ;;  %1315 = vst.msk [vmem:[%s2484_s20 + $0x18] sm:$0xff] %vm1311_vm0, %v1870_v3  ;;  %1889 = vrcp.f32 %v1258_v1  ;;  %v1169_v7 = vpop.xlane.xlu1 %1168 }
 0x40a   : > { %v1167_v8 = vpop.xlane.xlu0 %1166  ;;  %v1874_v52 = vpop.eup %1873  ;;  %1313 = vst.msk [vmem:[%s2484_s20 + $0x8] sm:$0xff] %vm1311_vm0, %v1872_v6  ;;  %1891 = vrcp.f32 %v1265_v4  ;;  %v1195_v9 = vadd.f32 %v2464_v63, %v1169_v7 }
 0x40b   : > { %v1194_v10 = vadd.f32 %v2464_v63, %v1167_v8  ;;  %v1876_v11 = vpop.eup %1875  ;;  %v1264_v12 = vadd.f32 1.0, %v1874_v52  ;;  %1893 = vpow2.f32 %v1492_v2 }
 0x40c   : > { %v1878_v13 = vpop.eup %1877  ;;  %v1263_v14 = vadd.f32 1.0, %v1876_v11  ;;  %1895 = vpow2.f32 %v1491_v5  ;;  %v1496_v15 = vmul.f32 -1.442695, %v1195_v9 }
 0x40d   : > { %v1495_v16 = vmul.f32 -1.442695, %v1194_v10  ;;  %v1880_v17 = vpop.eup %1879  ;;  %1319 = vst.msk [vmem:[%s2484_s20 + $0x38] sm:$0xff] %vm1311_vm0, %v1878_v13  ;;  %1897 = vrcp.f32 %v1264_v12 }
 0x40e   : > { %v1171_v18 = vpop.xlane.xlu0 %1170  ;;  %v1882_v19 = vpop.eup %1881  ;;  %1318 = vst.msk [vmem:[%s2484_s20 + $0x30] sm:$0xff] %vm1311_vm0, %v1880_v17  ;;  %1899 = vrcp.f32 %v1263_v14 }
 0x40f   : > { %v1196_v20 = vadd.f32 %v2464_v63, %v1171_v18  ;;  %v1884_v21 = vpop.eup %1883  ;;  %v1262_v22 = vadd.f32 1.0, %v1882_v19  ;;  %1901 = vpow2.f32 %v1496_v15 }
 0x410   : > { %v1886_v23 = vpop.eup %1885  ;;  %v1269_v24 = vadd.f32 1.0, %v1884_v21  ;;  %1903 = vpow2.f32 %v1495_v16 }
 0x411   : > { %v1497_v25 = vmul.f32 -1.442695, %v1196_v20  ;;  %v1888_v26 = vpop.eup %1887  ;;  %1317 = vst.msk [vmem:[%s2484_s20 + $0x28] sm:$0xff] %vm1311_vm0, %v1886_v23  ;;  %1905 = vrcp.f32 %v1262_v22 }
 0x412   : > { %1907 = vrcp.f32 %v1269_v24  ;;  %v1268_v27 = vadd.f32 1.0, %v1888_v26 }
 0x413   : > { %v1890_v29 = vpop.eup %1889  ;;  %1909 = vpow2.f32 %v1497_v25 }
 0x414   : > { %v1892_v63 = vpop.eup %1891  ;;  %1316 = vst.msk [vmem:[%s2484_s20 + $0x20] sm:$0xff] %vm1311_vm0, %v1890_v29  ;;  %1911 = vrcp.f32 %v1268_v27 }
 0x415   : > { %v1894_v30 = vpop.eup %1893  ;;  %1323 = vst.msk [vmem:[%s2484_s20 + $0x58] sm:$0xff] %vm1311_vm0, %v1892_v63 }
 0x416   : > { %v1896_v31 = vpop.eup %1895  ;;  %v1267_v32 = vadd.f32 1.0, %v1894_v30 }
 0x417   : > { %v1898_v33 = vpop.eup %1897  ;;  %v1266_v34 = vadd.f32 1.0, %v1896_v31 }
 0x418   : > { %v1900_v35 = vpop.eup %1899  ;;  %1322 = vst.msk [vmem:[%s2484_s20 + $0x50] sm:$0xff] %vm1311_vm0, %v1898_v33  ;;  %1913 = vrcp.f32 %v1267_v32 }
 0x419   : > { %v1902_v36 = vpop.eup %1901  ;;  %1321 = vst.msk [vmem:[%s2484_s20 + $0x48] sm:$0xff] %vm1311_vm0, %v1900_v35  ;;  %1915 = vrcp.f32 %v1266_v34 }
 0x41a   : > { %v1904_v37 = vpop.eup %1903  ;;  %v1271_v38 = vadd.f32 1.0, %v1902_v36 }
 0x41b   : > { %v1906_v39 = vpop.eup %1905  ;;  %v1270_v40 = vadd.f32 1.0, %v1904_v37 }
 0x41c   : > { %v1908_v41 = vpop.eup %1907  ;;  %1320 = vst.msk [vmem:[%s2484_s20 + $0x40] sm:$0xff] %vm1311_vm0, %v1906_v39  ;;  %1917 = vrcp.f32 %v1271_v38 }
 0x41d   : > { %v1910_v42 = vpop.eup %1909  ;;  %1327 = vst.msk [vmem:[%s2484_s20 + $0x78] sm:$0xff] %vm1311_vm0, %v1908_v41  ;;  %1919 = vrcp.f32 %v1270_v40 }
 0x41e   : > { %v1912_v43 = vpop.eup %1911  ;;  %v1272_v44 = vadd.f32 1.0, %v1910_v42 }
 0x41f   : > { %1326 = vst.msk [vmem:[%s2484_s20 + $0x70] sm:$0xff] %vm1311_vm0, %v1912_v43 }
 0x420   : > { %1921 = vrcp.f32 %v1272_v44 }
 0x422   : > { %v1914_v45 = vpop.eup %1913 }
 0x423   : > { %v1916_v46 = vpop.eup %1915  ;;  %1325 = vst.msk [vmem:[%s2484_s20 + $0x68] sm:$0xff] %vm1311_vm0, %v1914_v45 }
 0x424   : > { %1324 = vst.msk [vmem:[%s2484_s20 + $0x60] sm:$0xff] %vm1311_vm0, %v1916_v46 }
 0x426   : > { %v1918_v28 = vpop.eup %1917 }
 0x427   : > { %v1920_v47 = vpop.eup %1919  ;;  %1329 = vst.msk [vmem:[%s2484_s20 + $0x88] sm:$0xff] %vm1311_vm0, %v1918_v28 }
 0x428   : > { %1328 = vst.msk [vmem:[%s2484_s20 + $0x80] sm:$0xff] %vm1311_vm0, %v1920_v47 }
 0x42a   : > { %v1922_v48 = vpop.eup %1921 }
 0x42b   : > { %1330 = vst.msk [vmem:[%s2484_s20 + $0x90] sm:$0xff] %vm1311_vm0, %v1922_v48 }
 0x42c PF: > { %p23_p11 = scmp.ge.s32.totalorder %s2273_s30, 4   ;;  %s2570_s11 = smov %s2071_s12 }
 0x42d   : > { %s2571_s12 = smov %s2075_s13  ;;  %s2572_s13 = smov %s2283_s26 }
 0x42e   : > { %s2573_s14 = smov %s2273_s30  ;;  %25 = sbr.rel (!%p23_p11) target bundleno = 8 (0x8), region = 108 }
 0x435   :  { %1353 = vsyncpa [#allocation4], 1 }
 0x436   :  { %1355 = vsyncpa [#allocation4 + $0x1], 1 }
 0x437   :  { %1356 = vsyncpa [#allocation6], 1 }
 0x438   :  { %1357 = vsyncpa [#allocation9], 1 }

// kernel: tpu_custom_call.1
= control target key start
LH: loop header
LB: loop body
LE: loop exit
PB: predicated region body
PF: predicated region fallthrough
CT: control target
= control target key end

     0   :  { %s2543_s0 = inlined_call_operand.hbm [shape: bf16[304,128], index: 0, kind: input, shape index: {}]   ;;  %s2544_s1 = inlined_call_operand.hbm [shape: bf16[128,128], index: 1, kind: input, shape index: {}]   ;;  %s2545_s2 = inlined_call_operand.vmem [shape: f32[1,128], index: 2, kind: input, shape index: {}]   ;;  %s2546_s3 = inlined_call_operand.hbm [shape: bf16[128,128], index: 3, kind: input, shape index: {}]   ;;  %s2547_s4 = inlined_call_operand.vmem [shape: f32[1,128], index: 4, kind: input, shape index: {}]   ;;  %s2548_s5 = inlined_call_operand.hbm [shape: bf16[128,128], index: 5, kind: input, shape index: {}]   ;;  %s2549_s6 = inlined_call_operand.vmem [shape: f32[1,128], index: 6, kind: input, shape index: {}]   ;;  %s2550_s7 = inlined_call_operand.vmem [shape: f32[1,128], index: 7, kind: input, shape index: {}]   ;;  %s2551_s8 = inlined_call_operand.<no memory space> [shape: f32[1,1], index: 8, kind: input, shape index: {}]   ;;  %s2552_s9 = inlined_call_operand.vmem [shape: f32[304,1], index: 9, kind: output, shape index: {}]  }
   0x1   :  { %v14_v0 = vstv %s2551_s8 }
   0x2   :  { %15 = vst [vmem:[#allocation2] sm:$0x1] %v14_v0 }
   0x3   :  { %16 = vsyncpa [#allocation4], 0 }
   0x4   :  { %18 = vsyncpa [#allocation4 + $0x1], 0 }
   0x5   :  { %19 = vsyncpa [#allocation6], 0 }
   0x6   :  { %20 = vsyncpa [#allocation9], 0  ;;  %s2140_s11 = smov 0   ;;  %s2142_s12 = smov 0  }
   0x7   :  { %s2144_s13 = smov 0   ;;  %s2146_s14 = smov 0  }
   0x8 LB: > { %s2555_s8 = sadd.s32 4294967295, %s2079_s14   ;;  %p46_p0 = scmp.ne.s32.totalorder %s2071_s12, %s2067_s11  ;;  %s2079_s14 = sphi %s2146_s14, %s2573_s14   ;;  %s2075_s13 = sphi %s2144_s13, %s2572_s13   ;;  %s2071_s12 = sphi %s2142_s12, %s2571_s12   ;;  %s2067_s11 = sphi %s2140_s11, %s2570_s11  }
   0x9   : > { %p2162_p1 = scmp.eq.s32.totalorder %s2555_s8, 0  ;;  %p1429_p2 = scmp.ge.s32.totalorder %s2079_s14, 1 }
   0xa   : > { %p251_p3 = scmp.lt.s32.totalorder %s2079_s14, 3  ;;  %s2081_s18 = smov [#allocation5]  }
   0xb   : > { %s2559_s15 = scalar_select %p2162_p1, 1, 0 }
   0xc   : > { %p2170_p4 = por %p2162_p1, %p46_p0  ;;  %p2174_p5 = pnand %p1429_p2, %p251_p3 }
   0xd   : > { %s263_s19 = sshll.u32 %s2081_s18, 4  ;;  %s2082_s21 = smov [#allocation7]   ;;  %s2178_s19 = int_to_ptr.vmem [resolvable:$true] %s263_s19 }
   0xe   : > { %s2560_s16 = scalar_select %p2170_p4, 1, 0 }
   0xf   : > { %s2561_s17 = scalar_select %p2174_p5, 1, 0 }
  0x10   : > { %p1695_p6 = pneg %p2174_p5  ;;  %s279_s22 = sshll.u32 %s2082_s21, 4  ;;  %s2188_s22 = int_to_ptr.vmem [resolvable:$true] %s279_s22 }
  0x11   : > { %s2083_s23 = smov [#allocation8]   ;;  %s1923_s27 = scalar_lea.hbm %s2544_s1, 1024 }
  0x12   : > { %p2184_p7 = pnand %p1695_p6, %p2162_p1  ;;  %s2190_s24 = sshll.u32 %s2083_s23, 4  ;;  %s296_s24 = int_to_ptr.vmem [resolvable:$true] %s2190_s24 }
  0x13   : > { %p1924_p8 = scmp.ne.s32.totalorder %s2544_s1, %s1923_s27  ;;  %p1930_p12 = scmp.lt.u32.totalorder %s1923_s27, %s2544_s1 }
  0x14   : > { %p2200_p9 = pneg %p2184_p7 }
  0x16   : > { %p1926_p10 = pnand %p2200_p9, %p1924_p8 }
  0x18   : > { %p1927_p11 = pneg %p1926_p10 }
  0x1a   : > { %p1932_p13 = pnand %p1930_p12, %p1927_p11 }
  0x1c   : > { %1935 = shalt.err (!%p1932_p13)
}
  0x1d   : > { %s1936_s18 = scalar_lea.vmem %s2178_s19, 1024  ;;  %p1944_p6 = scmp.lt.s32.totalorder %s2178_s19, %s2178_s19 }
  0x1e   : > { %p1937_p0 = scmp.ne.s32.totalorder %s2178_s19, %s1936_s18  ;;  %p1945_p1 = scmp.lt.s32.totalorder %s1936_s18, %s1936_s18 }
  0x20   : > { %p1939_p2 = pnand %p1937_p0, %p2200_p9  ;;  %p1946_p8 = por %p1945_p1, %p1944_p6 }
  0x22   : > { %p1940_p3 = pneg %p1939_p2 }
  0x24   : > { %p1947_p10 = pnand %p1946_p8, %p1940_p3 }
  0x26   : > { %1950 = shalt.err (!%p1947_p10)
}
  0x27   : > { %s2558_s21 = smov 64   ;;  %s2085_s23 = smov 4  }
  0x28   : > { %1698 = dma.hbm_to_vmem [thread:$0]  (!%p2184_p7), %s2544_s1, 1024, %s2178_s19, [#allocation6], %s2558_s21, %s2558_s21, %s2085_s23  }
  0x29   : > { %s1951_s29 = scalar_lea.hbm %s2546_s3, 1024 }
  0x2a   : > { %p1952_p1 = scmp.ne.s32.totalorder %s2546_s3, %s1951_s29  ;;  %p1958_p13 = scmp.lt.u32.totalorder %s1951_s29, %s2546_s3 }
  0x2c   : > { %p1954_p11 = pnand %p1952_p1, %p2200_p9 }
  0x2e   : > { %p1955_p12 = pneg %p1954_p11 }
  0x30   : > { %p1960_p0 = pnand %p1958_p13, %p1955_p12 }
  0x32   : > { %1963 = shalt.err (!%p1960_p0)
}
  0x33   : > { %s1964_s19 = scalar_lea.vmem %s2188_s22, 1024  ;;  %p1972_p8 = scmp.lt.s32.totalorder %s2188_s22, %s2188_s22 }
  0x34   : > { %p1965_p2 = scmp.ne.s32.totalorder %s2188_s22, %s1964_s19  ;;  %p1973_p10 = scmp.lt.s32.totalorder %s1964_s19, %s1964_s19 }
  0x36   : > { %p1967_p3 = pnand %p1965_p2, %p2200_p9  ;;  %p1974_p1 = por %p1973_p10, %p1972_p8 }
  0x38   : > { %p1968_p6 = pneg %p1967_p3 }
  0x3a   : > { %p1975_p11 = pnand %p1974_p1, %p1968_p6 }
  0x3c   : > { %1978 = shalt.err (!%p1975_p11)
}
  0x3d   : > { %1701 = dma.hbm_to_vmem [thread:$0]  (!%p2184_p7), %s2546_s3, 1024, %s2188_s22, [#allocation6], %s2558_s21, %s2558_s21, %s2085_s23  }
  0x3e   : > { %s1979_s28 = scalar_lea.hbm %s2548_s5, 1024 }
  0x3f   : > { %p1980_p12 = scmp.ne.s32.totalorder %s2548_s5, %s1979_s28  ;;  %p1986_p2 = scmp.lt.u32.totalorder %s1979_s28, %s2548_s5 }
  0x41   : > { %p1982_p13 = pnand %p1980_p12, %p2200_p9 }
  0x43   : > { %p1983_p0 = pneg %p1982_p13 }
  0x45   : > { %p1988_p3 = pnand %p1986_p2, %p1983_p0 }
  0x47   : > { %1991 = shalt.err (!%p1988_p3)
}
  0x48   : > { %s1992_s19 = scalar_lea.vmem %s296_s24, 1024  ;;  %p2000_p1 = scmp.lt.s32.totalorder %s296_s24, %s296_s24 }
  0x49   : > { %p1993_p6 = scmp.ne.s32.totalorder %s296_s24, %s1992_s19  ;;  %p2001_p11 = scmp.lt.s32.totalorder %s1992_s19, %s1992_s19 }
  0x4b   : > { %p1995_p8 = pnand %p1993_p6, %p2200_p9  ;;  %p2002_p4 = por %p2001_p11, %p2000_p1 }
  0x4d   : > { %p1996_p10 = pneg %p1995_p8 }
  0x4f   : > { %p2003_p5 = pnand %p2002_p4, %p1996_p10 }
  0x51   : > { %2006 = shalt.err (!%p2003_p5)
}
  0x52   : > { %1704 = dma.hbm_to_vmem [thread:$0]  (!%p2184_p7), %s2548_s5, 1024, %s296_s24, [#allocation9], %s2558_s21, %s2558_s21, %s2085_s23  }
  0x53   : > { %s2273_s30 = sadd.s32 1, %s2079_s14   ;;  %s33_s25 = sadd.s32 1, %s2075_s13 }
  0x54   : > { %s30_s20 = ssub.s32 %s2079_s14, %s2273_s30  ;;  %p40_p5 = scmp.ne.s32.totalorder %s2075_s13, %s2071_s12 }
  0x55   : > { %p31_p4 = scmp.eq.s32.totalorder %s30_s20, 0  ;;  %p41_p9 = scmp.eq.s32.totalorder %s2079_s14, 0 }
  0x56   : > { %p1712_p12 = scmp.lt.s32.totalorder %s2079_s14, 2  ;;  %s318_s27 = sand.u32 1, %s2075_s13  }
  0x57   : > { %s2283_s26 = scalar_select %p31_p4, %s2075_s13, %s33_s25  }
  0x58   : > { %p42_p13 = por %p41_p9, %p40_p5  ;;  %s1679_s28 = smul.u32 76, %s318_s27 }
  0x59   : > { %s1500_s29 = smul.u32 1216, %s2079_s14  ;;  %s2298_s8 = scalar_lea.sflag [#allocation4], %s318_s27 }
  0x5a   : > { %p2287_p0 = pnand %p1712_p12, %p42_p13  ;;  %s322_s19 = scalar_lea.vmem [#allocation3], %s1679_s28 }
  0x5b   : > { %s2294_s18 = scalar_lea.hbm %s2543_s0, %s1500_s29  ;;  %s329_s22 = sshll.u32 %s322_s19, 4  ;;  %s2296_s22 = int_to_ptr.vmem [resolvable:$true] %s329_s22 }
  0x5c   : > { %s2007_s20 = scalar_lea.hbm %s2294_s18, 1216  ;;  %p2009_p2 = pneg %p2287_p0 }
  0x5d   : > { %p2008_p7 = scmp.ne.s32.totalorder %s2294_s18, %s2007_s20  ;;  %s2012_s24 = scalar_lea.hbm %s2543_s0, 2432 }
  0x5e   : > { %p2013_p8 = scmp.lt.u32.totalorder %s2294_s18, %s2543_s0  ;;  %p2014_p10 = scmp.lt.u32.totalorder %s2012_s24, %s2007_s20 }
  0x5f   : > { %p2010_p3 = pnand %p2009_p2, %p2008_p7  ;;  %p2016_p11 = scmp.lt.u32.totalorder %s2007_s20, %s2294_s18 }
  0x60   : > { %p2015_p1 = por %p2014_p10, %p2013_p8 }
  0x61   : > { %p2011_p6 = pneg %p2010_p3 }
  0x62   : > { %p2017_p4 = por %p2016_p11, %p2015_p1 }
  0x64   : > { %p2018_p5 = pnand %p2017_p4, %p2011_p6 }
  0x66   : > { %2021 = shalt.err (!%p2018_p5)
}
  0x67   : > { %s2022_s27 = scalar_lea.vmem %s2296_s22, 1216  ;;  %s2086_s28 = smov [#allocation3]  }
  0x68   : > { %p2023_p9 = scmp.ne.s32.totalorder %s2296_s22, %s2022_s27  ;;  %s2027_s19 = sshll.u32 %s2086_s28, 4  ;;  %s2028_s19 = int_to_ptr.vmem [resolvable:$false] %s2027_s19 }
  0x69   : > { %s2029_s21 = scalar_lea.vmem %s2028_s19, 2432  ;;  %p2030_p7 = scmp.lt.s32.totalorder %s2296_s22, %s2028_s19 }
  0x6a   : > { %p2025_p12 = pnand %p2023_p9, %p2009_p2  ;;  %p2031_p3 = scmp.lt.s32.totalorder %s2029_s21, %s2022_s27 }
  0x6c   : > { %p2026_p13 = pneg %p2025_p12  ;;  %p2032_p8 = por %p2031_p3, %p2030_p7 }
  0x6e   : > { %p2033_p10 = pnand %p2032_p8, %p2026_p13 }
  0x70   : > { %2036 = shalt.err (!%p2033_p10)
}
  0x71   : > { %s2565_s20 = smov 64   ;;  %p2566_p2 = scmp.ne.s32.totalorder %s2561_s17, 0 }
  0x72   : > { %1708 = dma.hbm_to_vmem [thread:$0]  (!%p2287_p0), %s2294_s18, 1216, %s2296_s22, %s2298_s8, %s2565_s20, %s2565_s20, %s2085_s23  }
  0x73   : > { %341 = sbr.rel (%p2566_p2) target bundleno = 1068 (0x42c), region = 56  ;;  %s343_s25 = sand.u32 (!%p2566_p2), 1, %s2071_s12  }
  0x74   : > { %s1680_s29 = smul.u32 (!%p2566_p2), 76, %s343_s25  ;;  %s344_s24 = scalar_lea.sflag (!%p2566_p2), [#allocation4], %s343_s25 }
  0x75   : > { %p2567_p6 = scmp.ne.s32.totalorder (!%p2566_p2), %s2560_s16, 0 }
  0x76   : > { %s2332_s11 = scalar_lea.vmem (!%p2566_p2), [#allocation3], %s1680_s29 }
  0x7a   : > { %2054 = dma.done.wait (%p2567_p6), %s344_s24, 1216  }
  0x7b   : > { %2056 = vsyncadd (%p2567_p6), %s344_s24, 4294966080  ;;  %p2568_p1 = scmp.ne.s32.totalorder %s2559_s15, 0 }
  0x7d   : > { %2058 = dma.done.wait (%p2568_p1), [#allocation6], 2048  }
  0x7e   : > { %2060 = vsyncadd (%p2568_p1), [#allocation6], 4294965248 }
  0x7f   : > { %2062 = dma.done.wait (%p2568_p1), [#allocation9], 1024  }
  0x80   : > { %2064 = vsyncadd (%p2568_p1), [#allocation9], 4294966272  ;;  %v1753_v1 = vld [vmem:[#allocation5] sm:$0xff]   ;;  %v1754_v2 = vld [vmem:[#allocation5 + $0x8] sm:$0xff]   ;;  %s2569_s27 = sadd.s32 4294967295, %s2079_s14   ;;  %vm1311_vm0 = vcmask 7168  }
  0x81   : > { %1555 = vmatprep.subr.bf16.mxu0 %v1753_v1  ;;  %v1755_v3 = vld [vmem:[#allocation5 + $0x10] sm:$0xff]   ;;  %v1756_v4 = vld [vmem:[#allocation5 + $0x18] sm:$0xff]   ;;  %v1757_v6 = vld [vmem:[#allocation5 + $0x20] sm:$0xff]   ;;  %s395_s28 = smul.u32 19, %s2569_s27 }
  0x82   : > { %1556 = vmatpush3.bf16.msra.mxu0 %v1753_v1  ;;  %v1761_v5 = vld [vmem:[%s2332_s11] sm:$0xff]   ;;  %v1771_v9 = vld [vmem:[#allocation7] sm:$0xff]   ;;  %v1770_v21 = vld [vmem:[%s2332_s11 + $0x48] ss:$0 sps:$4 sm:$0xff]  }
  0x83   : > { %1557 = vmatprep.subr.bf16.mxu0 %v1754_v2  ;;  %1571 = vmatprep.mubr.bf16.mxu0 %v1761_v5  ;;  %v1758_v7 = vld [vmem:[#allocation5 + $0x28] sm:$0xff]   ;;  %v1759_v8 = vld [vmem:[#allocation5 + $0x30] sm:$0xff]   ;;  %v1760_v12 = vld [vmem:[#allocation5 + $0x38] sm:$0xff]   ;;  %p396_p0 = scmp.lt.s32.totalorder %s395_s28, 37 }
  0x84   : > { %v1772_v10 = vld [vmem:[#allocation7 + $0x8] sm:$0xff]   ;;  %1591 = vmatprep.subr.bf16.mxu1 %v1771_v9  ;;  %v1773_v11 = vld [vmem:[#allocation7 + $0x10] sm:$0xff]   ;;  %v1774_v22 = vld [vmem:[#allocation7 + $0x18] sm:$0xff]  }
  0x85   : > { %1592 = vmatpush3.bf16.msra.mxu1 %v1771_v9  ;;  %v1762_v13 = vld [vmem:[%s2332_s11 + $0x8] sm:$0xff]   ;;  %v1763_v14 = vld [vmem:[%s2332_s11 + $0x10] sm:$0xff]   ;;  %v1764_v15 = vld [vmem:[%s2332_s11 + $0x18] sm:$0xff]   ;;  %s2575_s28 = smov (!%p396_p0, %s395_s28), 37 }
  0x86   : > { %1558 = vmatpush3.bf16.msra.mxu0 %v1754_v2  ;;  %1593 = vmatprep.subr.bf16.mxu1 %v1772_v10  ;;  %v1765_v16 = vld [vmem:[%s2332_s11 + $0x20] sm:$0xff]   ;;  %v1766_v17 = vld [vmem:[%s2332_s11 + $0x28] sm:$0xff]   ;;  %v1767_v18 = vld [vmem:[%s2332_s11 + $0x30] sm:$0xff]   ;;  %s1439_s14 = sshll.u32 %s2575_s28, 3 }
  0x87   : > { %1559 = vmatprep.subr.bf16.mxu0 %v1755_v3  ;;  %v1768_v19 = vld [vmem:[%s2332_s11 + $0x38] sm:$0xff]   ;;  %v1769_v20 = vld [vmem:[%s2332_s11 + $0x40] sm:$0xff]   ;;  %s2484_s20 = scalar_lea.vmem %s2552_s9, %s1439_s14 }
  0x88   : > { %v1775_v23 = vld [vmem:[#allocation7 + $0x20] sm:$0xff]   ;;  %v1776_v24 = vld [vmem:[#allocation7 + $0x28] sm:$0xff]   ;;  %v1777_v25 = vld [vmem:[#allocation7 + $0x30] sm:$0xff]  }
  0x89   : > { %1594 = vmatpush3.bf16.msra.mxu1 %v1772_v10  ;;  %v1778_v26 = vld [vmem:[#allocation7 + $0x38] sm:$0xff]   ;;  %v1779_v27 = vld [vmem:[#allocation8] sm:$0xff]   ;;  %v1780_v28 = vld [vmem:[#allocation8 + $0x8] sm:$0xff]  }
  0x8a   : > { %1560 = vmatpush3.bf16.msra.mxu0 %v1755_v3  ;;  %1595 = vmatprep.subr.bf16.mxu1 %v1773_v11  ;;  %v2356_v29 = vld [vmem:[#allocation8 + $0x10] sm:$0xff]   ;;  %v2359_v30 = vld [vmem:[#allocation8 + $0x18] sm:$0xff]   ;;  %v2367_v32 = vld [vmem:[%s2545_s2] ss:$0 sm:$0xff] }
  0x8b   : > { %1561 = vmatprep.subr.bf16.mxu0 %v1756_v4 }
  0x8d   : > { %1596 = vmatpush3.bf16.msra.mxu1 %v1773_v11 }
  0x8e   : > { %1562 = vmatpush3.bf16.msra.mxu0 %v1756_v4  ;;  %1597 = vmatprep.subr.bf16.mxu1 %v1774_v22 }
  0x8f   : > { %1563 = vmatprep.subr.bf16.mxu0 %v1757_v6 }
  0x91   : > { %1598 = vmatpush3.bf16.msra.mxu1 %v1774_v22 }
  0x92   : > { %1564 = vmatpush3.bf16.msra.mxu0 %v1757_v6  ;;  %1599 = vmatprep.subr.bf16.mxu1 %v1775_v23 }
  0x93   : > { %1565 = vmatprep.subr.bf16.mxu0 %v1758_v7 }
  0x95   : > { %1600 = vmatpush3.bf16.msra.mxu1 %v1775_v23 }
  0x96   : > { %1566 = vmatpush3.bf16.msra.mxu0 %v1758_v7  ;;  %1601 = vmatprep.subr.bf16.mxu1 %v1776_v24 }
  0x97   : > { %1567 = vmatprep.subr.bf16.mxu0 %v1759_v8 }
  0x99   : > { %1602 = vmatpush3.bf16.msra.mxu1 %v1776_v24 }
  0x9a   : > { %1568 = vmatpush3.bf16.msra.mxu0 %v1759_v8  ;;  %1603 = vmatprep.subr.bf16.mxu1 %v1777_v25 }
  0x9b   : > { %1569 = vmatprep.subr.bf16.mxu0 %v1760_v12 }
  0x9d   : > { %1604 = vmatpush3.bf16.msra.mxu1 %v1777_v25 }
  0x9e   : > { %1570 = vmatpush3.bf16.msra.mxu0 %v1760_v12  ;;  %1605 = vmatprep.subr.bf16.mxu1 %v1778_v26 }
  0x9f   : > { %1627 = vmatprep.subr.bf16.mxu0 %v1779_v27 }
  0xa1   : > { %1572 = vmatmul.mubr.bf16.vlgmr.msra.gmra.mrb[0].mxu0 %v1762_v13  ;;  %1606 = vmatpush3.bf16.msra.mxu1 %v1778_v26 }
  0xa2   : > { %1575 = vmatprep.mubr.bf16.mxu0 %v1763_v14  ;;  %1663 = vmatprep.subr.bf16.mxu1 %v1779_v27 }
  0xa3   : > { %1628 = vmatpush3.bf16.msra.mxu0 %v1779_v27 }
  0xa4   : > { %1629 = vmatprep.subr.bf16.mxu0 %v1780_v28 }
  0xa7   : > { %1630 = vmatpush3.bf16.msra.mxu0 %v1780_v28 }
  0xa8   : > { %1631 = vmatprep.subr.bf16.mxu0 %v2356_v29 }
  0xa9   : > { %1576 = vmatmul.mubr.bf16.gmra.mrb[4].mxu0 %v1764_v15 }
  0xaa   : > { %1579 = vmatprep.mubr.bf16.mxu0 %v1765_v16 }
  0xab   : > { %1632 = vmatpush3.bf16.msra.mxu0 %v2356_v29 }
  0xac   : > { %1633 = vmatprep.subr.bf16.mxu0 %v2359_v30 }
  0xaf   : > { %1634 = vmatpush3.bf16.msra.mxu0 %v2359_v30 }
  0xb1   : > { %1580 = vmatmul.mubr.bf16.gmra.mrb[8].mxu0 %v1766_v17 }
  0xb2   : > { %1583 = vmatprep.mubr.bf16.mxu0 %v1767_v18 }
  0xb9   : > { %1584 = vmatmul.mubr.bf16.gmra.mrb[12].mxu0 %v1768_v19 }
  0xba   : > { %1587 = vmatprep.mubr.bf16.mxu0 %v1769_v20 }
  0xc1   : > { %1588 = vmatmul.mubr.bf16.gmra.mrb[16].mxu0 %v1770_v21 }
 0x174   : > { %v1573_v31 = vpop.f32.mrb[0].mxu0 }
 0x175   : > { %v584_v33 = vpop.f32.mrb[1].mxu0  ;;  %v593_v35 = vadd.f32 %v1573_v31, %v2367_v32 }
 0x176   : > { %v1574_v34 = vpop.f32.mrb[2].mxu0  ;;  %v585_v38 = vadd.f32 %v2367_v32, %v584_v33 }
 0x177   : > { %v596_v36 = vadd.f32 %v1574_v34, %v2367_v32  ;;  %v587_v37 = vpop.f32.mrb[3].mxu0 }
 0x178   : > { %v588_v39 = vadd.f32 %v2367_v32, %v587_v37 }
 0x179   : > { %v663_v40 = vpack.c.bf16 %v596_v36, %v593_v35 }
 0x17a   : > { %v662_v41 = vpack.c.bf16 %v588_v39, %v585_v38 }
 0x17c   : > { %v1577_v42 = vpop.f32.mrb[4].mxu0  ;;  %1787 = vtanh.bf16 %v662_v41 }
 0x17d   : > { %1789 = vtanh.bf16 %v663_v40  ;;  %v600_v43 = vpop.f32.mrb[5].mxu0  ;;  %v609_v45 = vadd.f32 %v1577_v42, %v2367_v32 }
 0x17e   : > { %v1578_v44 = vpop.f32.mrb[6].mxu0  ;;  %v601_v48 = vadd.f32 %v2367_v32, %v600_v43 }
 0x17f   : > { %v612_v46 = vadd.f32 %v1578_v44, %v2367_v32  ;;  %v603_v47 = vpop.f32.mrb[7].mxu0 }
 0x180   : > { %v604_v49 = vadd.f32 %v2367_v32, %v603_v47 }
 0x181   : > { %v665_v50 = vpack.c.bf16 %v612_v46, %v609_v45 }
 0x182   : > { %v664_v51 = vpack.c.bf16 %v604_v49, %v601_v48 }
 0x184   : > { %1791 = vtanh.bf16 %v664_v51  ;;  %v1581_v52 = vpop.f32.mrb[8].mxu0 }
 0x185   : > { %1793 = vtanh.bf16 %v665_v50  ;;  %v616_v53 = vpop.f32.mrb[9].mxu0  ;;  %v625_v56 = vadd.f32 %v1581_v52, %v2367_v32 }
 0x186   : > { %v1582_v54 = vpop.f32.mrb[10].mxu0  ;;  %v617_v60 = vadd.f32 %v2367_v32, %v616_v53 }
 0x187   : > { %v1788_v55 = vpop.eup %1787  ;;  %v628_v57 = vadd.f32 %v1582_v54, %v2367_v32  ;;  %v619_v58 = vpop.f32.mrb[11].mxu0 }
 0x188   : > { %v1790_v59 = vpop.eup %1789  ;;  %v620_v61 = vadd.f32 %v2367_v32, %v619_v58  ;;  %1607 = vmatprep.mubr.bf16.mxu1 %v1788_v55 }
 0x189   : > { %v667_v62 = vpack.c.bf16 %v628_v57, %v625_v56  ;;  %1608 = vmatmul.mubr.bf16.vlgmr.msra.gmra.mrb[0].mxu1 %v1790_v59 }
 0x18a   : > { %v666_v63 = vpack.c.bf16 %v620_v61, %v617_v60  ;;  %1671 = vmatpush3.bf16.msra.mxu1 %v1779_v27  ;;  %v1783_v27 = vld [vmem:[#allocation8 + $0x20] sm:$0xff]  }
 0x18b   : > { %1664 = vmatprep.subr.bf16.mxu1 %v1780_v28  ;;  %1635 = vmatprep.subr.bf16.mxu0 %v1783_v27 }
 0x18c   : > { %1795 = vtanh.bf16 %v666_v63  ;;  %v1585_v0 = vpop.f32.mrb[12].mxu0  ;;  %1636 = vmatpush3.bf16.msra.mxu0 %v1783_v27 }
 0x18d   : > { %1797 = vtanh.bf16 %v667_v62  ;;  %v632_v1 = vpop.f32.mrb[13].mxu0  ;;  %v641_v4 = vadd.f32 %v1585_v0, %v2367_v32 }
 0x18e   : > { %v1586_v2 = vpop.f32.mrb[14].mxu0  ;;  %1672 = vmatpush3.bf16.msra.mxu1 %v1780_v28  ;;  %v633_v8 = vadd.f32 %v2367_v32, %v632_v1  ;;  %v1784_v28 = vld [vmem:[#allocation8 + $0x28] sm:$0xff]  }
 0x18f   : > { %v1792_v3 = vpop.eup %1791  ;;  %v644_v5 = vadd.f32 %v1586_v2, %v2367_v32  ;;  %v635_v6 = vpop.f32.mrb[15].mxu0  ;;  %1665 = vmatprep.subr.bf16.mxu1 %v2356_v29  ;;  %1637 = vmatprep.subr.bf16.mxu0 %v1784_v28 }
 0x190   : > { %v1794_v7 = vpop.eup %1793  ;;  %v636_v9 = vadd.f32 %v2367_v32, %v635_v6  ;;  %1611 = vmatprep.mubr.bf16.mxu1 %v1792_v3  ;;  %1638 = vmatpush3.bf16.msra.mxu0 %v1784_v28 }
 0x191   : > { %v669_v10 = vpack.c.bf16 %v644_v5, %v641_v4  ;;  %1612 = vmatmul.mubr.bf16.gmra.mrb[4].mxu1 %v1794_v7 }
 0x192   : > { %v668_v11 = vpack.c.bf16 %v636_v9, %v633_v8  ;;  %1673 = vmatpush3.bf16.msra.mxu1 %v2356_v29  ;;  %v1785_v29 = vld [vmem:[#allocation8 + $0x30] sm:$0xff]  }
 0x193   : > { %1666 = vmatprep.subr.bf16.mxu1 %v2359_v30  ;;  %1639 = vmatprep.subr.bf16.mxu0 %v1785_v29 }
 0x194   : > { %1799 = vtanh.bf16 %v668_v11  ;;  %v1589_v12 = vpop.f32.mrb[16].mxu0  ;;  %1640 = vmatpush3.bf16.msra.mxu0 %v1785_v29 }
 0x195   : > { %1801 = vtanh.bf16 %v669_v10  ;;  %v657_v13 = vadd.f32 %v1589_v12, %v2367_v32  ;;  %v648_v14 = vpop.f32.mrb[17].mxu0 }
 0x196   : > { %v1590_v15 = vpop.f32.mrb[18].mxu0  ;;  %1674 = vmatpush3.bf16.msra.mxu1 %v2359_v30  ;;  %v649_v19 = vadd.f32 %v2367_v32, %v648_v14  ;;  %v1786_v30 = vld [vmem:[#allocation8 + $0x38] sm:$0xff]  }
 0x197   : > { %v1796_v16 = vpop.eup %1795  ;;  %v651_v17 = vpop.f32.mrb[19].mxu0  ;;  %v671_v21 = vpack.c.bf16 %v657_v13, %v657_v13  ;;  %1667 = vmatprep.subr.bf16.mxu1 %v1783_v27  ;;  %1641 = vmatprep.subr.bf16.mxu0 %v1786_v30 }
 0x198   : > { %v1798_v18 = vpop.eup %1797  ;;  %v652_v20 = vadd.f32 %v2367_v32, %v651_v17  ;;  %1615 = vmatprep.mubr.bf16.mxu1 %v1796_v16  ;;  %1642 = vmatpush3.bf16.msra.mxu0 %v1786_v30  ;;  %v2395_v32 = vld [vmem:[%s2547_s4] ss:$0 sm:$0xff] }
 0x199   : > { %1616 = vmatmul.mubr.bf16.gmra.mrb[8].mxu1 %v1798_v18 }
 0x19a   : > { %v670_v22 = vpack.c.bf16 %v652_v20, %v649_v19  ;;  %1675 = vmatpush3.bf16.msra.mxu1 %v1783_v27 }
 0x19b   : > { %1668 = vmatprep.subr.bf16.mxu1 %v1784_v28 }
 0x19c   : > { %1803 = vtanh.bf16 %v670_v22 }
 0x19d   : > { %1805 = vtanh.bf16 %v671_v21 }
 0x19e   : > { %1676 = vmatpush3.bf16.msra.mxu1 %v1784_v28  ;;  %v2419_v28 = vld [vmem:[%s2549_s6] ss:$0 sm:$0xff] }
 0x19f   : > { %v1800_v23 = vpop.eup %1799  ;;  %1669 = vmatprep.subr.bf16.mxu1 %v1785_v29 }
 0x1a0   : > { %v1802_v24 = vpop.eup %1801  ;;  %1619 = vmatprep.mubr.bf16.mxu1 %v1800_v23 }
 0x1a1   : > { %1620 = vmatmul.mubr.bf16.gmra.mrb[12].mxu1 %v1802_v24 }
 0x1a2   : > { %1677 = vmatpush3.bf16.msra.mxu1 %v1785_v29 }
 0x1a3   : > { %1670 = vmatprep.subr.bf16.mxu1 %v1786_v30 }
 0x1a6   : > { %1678 = vmatpush3.bf16.msra.mxu1 %v1786_v30 }
 0x1a7   : > { %v1804_v25 = vpop.eup %1803 }
 0x1a8   : > { %v1806_v26 = vpop.eup %1805  ;;  %1623 = vmatprep.mubr.bf16.mxu1 %v1804_v25 }
 0x1a9   : > { %1624 = vmatmul.mubr.bf16.gmra.mrb[16].mxu1 %v1806_v26 }
 0x25c   : > { %v1609_v31 = vpop.f32.mrb[0].mxu1 }
 0x25d   : > { %v787_v33 = vpop.f32.mrb[1].mxu1  ;;  %v796_v35 = vadd.f32 %v1609_v31, %v2395_v32 }
 0x25e   : > { %v1610_v34 = vpop.f32.mrb[2].mxu1  ;;  %v788_v38 = vadd.f32 %v2395_v32, %v787_v33 }
 0x25f   : > { %v799_v36 = vadd.f32 %v1610_v34, %v2395_v32  ;;  %v790_v37 = vpop.f32.mrb[3].mxu1 }
 0x260   : > { %v791_v39 = vadd.f32 %v2395_v32, %v790_v37 }
 0x261   : > { %v866_v40 = vpack.c.bf16 %v799_v36, %v796_v35 }
 0x262   : > { %v865_v41 = vpack.c.bf16 %v791_v39, %v788_v38 }
 0x264   : > { %1807 = vtanh.bf16 %v865_v41  ;;  %v1613_v42 = vpop.f32.mrb[4].mxu1 }
 0x265   : > { %1809 = vtanh.bf16 %v866_v40  ;;  %v803_v43 = vpop.f32.mrb[5].mxu1  ;;  %v812_v45 = vadd.f32 %v1613_v42, %v2395_v32 }
 0x266   : > { %v1614_v44 = vpop.f32.mrb[6].mxu1  ;;  %v804_v48 = vadd.f32 %v2395_v32, %v803_v43 }
 0x267   : > { %v815_v46 = vadd.f32 %v1614_v44, %v2395_v32  ;;  %v806_v47 = vpop.f32.mrb[7].mxu1 }
 0x268   : > { %v807_v49 = vadd.f32 %v2395_v32, %v806_v47 }
 0x269   : > { %v868_v50 = vpack.c.bf16 %v815_v46, %v812_v45 }
 0x26a   : > { %v867_v51 = vpack.c.bf16 %v807_v49, %v804_v48 }
 0x26c   : > { %1811 = vtanh.bf16 %v867_v51  ;;  %v1617_v52 = vpop.f32.mrb[8].mxu1 }
 0x26d   : > { %1813 = vtanh.bf16 %v868_v50  ;;  %v819_v53 = vpop.f32.mrb[9].mxu1  ;;  %v828_v56 = vadd.f32 %v1617_v52, %v2395_v32  ;;  %v2432_v52 = vld [vmem:[%s2550_s7] ss:$0 sm:$0xff] }
 0x26e   : > { %v1618_v54 = vpop.f32.mrb[10].mxu1  ;;  %v820_v60 = vadd.f32 %v2395_v32, %v819_v53 }
 0x26f   : > { %v1808_v55 = vpop.eup %1807  ;;  %v831_v57 = vadd.f32 %v1618_v54, %v2395_v32  ;;  %v822_v58 = vpop.f32.mrb[11].mxu1 }
 0x270   : > { %v1810_v59 = vpop.eup %1809  ;;  %v823_v61 = vadd.f32 %v2395_v32, %v822_v58  ;;  %1643 = vmatprep.mubr.bf16.mxu0 %v1808_v55 }
 0x271   : > { %v870_v62 = vpack.c.bf16 %v831_v57, %v828_v56  ;;  %1644 = vmatmul.mubr.bf16.vlgmr.msra.gmra.mrb[20].mxu0 %v1810_v59 }
 0x272   : > { %v869_v63 = vpack.c.bf16 %v823_v61, %v820_v60 }
 0x274   : > { %1815 = vtanh.bf16 %v869_v63  ;;  %v1621_v0 = vpop.f32.mrb[12].mxu1 }
 0x275   : > { %1817 = vtanh.bf16 %v870_v62  ;;  %v835_v1 = vpop.f32.mrb[13].mxu1  ;;  %v844_v4 = vadd.f32 %v1621_v0, %v2395_v32 }
 0x276   : > { %v1622_v2 = vpop.f32.mrb[14].mxu1  ;;  %v836_v8 = vadd.f32 %v2395_v32, %v835_v1 }
 0x277   : > { %v1812_v3 = vpop.eup %1811  ;;  %v847_v5 = vadd.f32 %v1622_v2, %v2395_v32  ;;  %v838_v6 = vpop.f32.mrb[15].mxu1 }
 0x278   : > { %v1814_v7 = vpop.eup %1813  ;;  %v839_v9 = vadd.f32 %v2395_v32, %v838_v6  ;;  %1647 = vmatprep.mubr.bf16.mxu0 %v1812_v3 }
 0x279   : > { %v872_v10 = vpack.c.bf16 %v847_v5, %v844_v4  ;;  %1648 = vmatmul.mubr.bf16.gmra.mrb[24].mxu0 %v1814_v7 }
 0x27a   : > { %v871_v11 = vpack.c.bf16 %v839_v9, %v836_v8 }
 0x27c   : > { %1819 = vtanh.bf16 %v871_v11  ;;  %v1625_v12 = vpop.f32.mrb[16].mxu1 }
 0x27d   : > { %1821 = vtanh.bf16 %v872_v10  ;;  %v860_v13 = vadd.f32 %v1625_v12, %v2395_v32  ;;  %v851_v14 = vpop.f32.mrb[17].mxu1 }
 0x27e   : > { %v1626_v15 = vpop.f32.mrb[18].mxu1  ;;  %v852_v19 = vadd.f32 %v2395_v32, %v851_v14 }
 0x27f   : > { %v1816_v16 = vpop.eup %1815  ;;  %v854_v17 = vpop.f32.mrb[19].mxu1  ;;  %v874_v21 = vpack.c.bf16 %v860_v13, %v860_v13 }
 0x280   : > { %v1818_v18 = vpop.eup %1817  ;;  %v855_v20 = vadd.f32 %v2395_v32, %v854_v17  ;;  %1651 = vmatprep.mubr.bf16.mxu0 %v1816_v16 }
 0x281   : > { %1652 = vmatmul.mubr.bf16.gmra.mrb[28].mxu0 %v1818_v18 }
 0x282   : > { %v873_v22 = vpack.c.bf16 %v855_v20, %v852_v19 }
 0x284   : > { %1823 = vtanh.bf16 %v873_v22 }
 0x285   : > { %1825 = vtanh.bf16 %v874_v21 }
 0x287   : > { %v1820_v23 = vpop.eup %1819 }
 0x288   : > { %v1822_v24 = vpop.eup %1821  ;;  %1655 = vmatprep.mubr.bf16.mxu1 %v1820_v23 }
 0x289   : > { %1656 = vmatmul.mubr.bf16.vlgmr.msra.gmra.mrb[20].mxu1 %v1822_v24 }
 0x28f   : > { %v1824_v25 = vpop.eup %1823 }
 0x290   : > { %v1826_v26 = vpop.eup %1825  ;;  %1659 = vmatprep.mubr.bf16.mxu1 %v1824_v25 }
 0x291   : > { %1660 = vmatmul.mubr.bf16.gmra.mrb[24].mxu1 %v1826_v26 }
 0x344   : > { %v1645_v27 = vpop.f32.mrb[20].mxu0 }
 0x345   : > { %v990_v29 = vpop.f32.mrb[21].mxu0  ;;  %v999_v31 = vadd.f32 %v1645_v27, %v2419_v28 }
 0x346   : > { %v1646_v30 = vpop.f32.mrb[22].mxu0  ;;  %v991_v34 = vadd.f32 %v2419_v28, %v990_v29 }
 0x347   : > { %v1002_v32 = vadd.f32 %v1646_v30, %v2419_v28  ;;  %v993_v33 = vpop.f32.mrb[23].mxu0 }
 0x348   : > { %v994_v35 = vadd.f32 %v2419_v28, %v993_v33 }
 0x349   : > { %v1069_v36 = vpack.c.bf16 %v1002_v32, %v999_v31 }
 0x34a   : > { %v1068_v37 = vpack.c.bf16 %v994_v35, %v991_v34 }
 0x34b   : > { %1827 = vtanh.bf16 %v1069_v36 }
 0x34c   : > { %1829 = vtanh.bf16 %v1068_v37  ;;  %v1649_v38 = vpop.f32.mrb[24].mxu0 }
 0x34d   : > { %v1006_v39 = vpop.f32.mrb[25].mxu0  ;;  %v1015_v41 = vadd.f32 %v1649_v38, %v2419_v28 }
 0x34e   : > { %v1650_v40 = vpop.f32.mrb[26].mxu0  ;;  %v1007_v44 = vadd.f32 %v2419_v28, %v1006_v39 }
 0x34f   : > { %v1018_v42 = vadd.f32 %v1650_v40, %v2419_v28  ;;  %v1009_v43 = vpop.f32.mrb[27].mxu0 }
 0x350   : > { %v1010_v45 = vadd.f32 %v2419_v28, %v1009_v43 }
 0x351   : > { %v1071_v46 = vpack.c.bf16 %v1018_v42, %v1015_v41 }
 0x352   : > { %v1070_v47 = vpack.c.bf16 %v1010_v45, %v1007_v44 }
 0x353   : > { %1831 = vtanh.bf16 %v1071_v46 }
 0x354   : > { %1833 = vtanh.bf16 %v1070_v47  ;;  %v1653_v48 = vpop.f32.mrb[28].mxu0 }
 0x355   : > { %v1022_v49 = vpop.f32.mrb[29].mxu0  ;;  %v1031_v54 = vadd.f32 %v1653_v48, %v2419_v28 }
 0x356   : > { %v1828_v50 = vpop.eup %1827  ;;  %v1654_v51 = vpop.f32.mrb[30].mxu0  ;;  %v1023_v58 = vadd.f32 %v2419_v28, %v1022_v49 }
 0x357   : > { %v1830_v53 = vpop.eup %1829  ;;  %v1034_v55 = vadd.f32 %v1654_v51, %v2419_v28  ;;  %v1025_v56 = vpop.f32.mrb[31].mxu0  ;;  %v1092_v57 = vunpack.c.l.bf16 %v1828_v50  ;;  %v1093_v63 = vunpack.c.h.bf16 %v1828_v50 }
 0x358   : > { %v1026_v59 = vadd.f32 %v2419_v28, %v1025_v56  ;;  %v1090_v60 = vunpack.c.l.bf16 %v1830_v53  ;;  %v1091_v2 = vunpack.c.h.bf16 %v1830_v53 }
 0x359   : > { %v1073_v61 = vpack.c.bf16 %v1034_v55, %v1031_v54  ;;  %v1117_v62 = vmul.f32 %v2432_v52, %v1092_v57  ;;  %v1118_v5 = vmul.f32 %v2432_v52, %v1093_v63  ;;  %v2464_v63 = vld [vmem:[#allocation2] ss:$0 sm:$0xff] }
 0x35a   : > { %v1072_v0 = vpack.c.bf16 %v1026_v59, %v1023_v58  ;;  %v1115_v1 = vmul.f32 %v2432_v52, %v1090_v60  ;;  %v1116_v8 = vmul.f32 %v2432_v52, %v1091_v2 }
 0x35b   : > { %1835 = vtanh.bf16 %v1073_v61  ;;  %1138 = vadd.xlane.f32.xlu1 %v1117_v62 }
 0x35c   : > { %1837 = vtanh.bf16 %v1072_v0  ;;  %v1657_v3 = vpop.f32.mrb[20].mxu1  ;;  %1134 = vadd.xlane.f32.xlu0 %v1115_v1 }
 0x35d   : > { %v1038_v4 = vpop.f32.mrb[21].mxu1  ;;  %v1047_v10 = vadd.f32 %v1657_v3, %v2419_v28 }
 0x35e   : > { %v1832_v6 = vpop.eup %1831  ;;  %v1658_v7 = vpop.f32.mrb[22].mxu1  ;;  %v1039_v15 = vadd.f32 %v2419_v28, %v1038_v4 }
 0x35f   : > { %v1834_v9 = vpop.eup %1833  ;;  %v1050_v11 = vadd.f32 %v1658_v7, %v2419_v28  ;;  %v1041_v12 = vpop.f32.mrb[23].mxu1  ;;  %1140 = vadd.xlane.f32.xlu1 %v1118_v5  ;;  %v1097_v13 = vunpack.c.h.bf16 %v1832_v6  ;;  %v1096_v14 = vunpack.c.l.bf16 %v1832_v6 }
 0x360   : > { %v1042_v16 = vadd.f32 %v2419_v28, %v1041_v12  ;;  %1136 = vadd.xlane.f32.xlu0 %v1116_v8  ;;  %v1095_v20 = vunpack.c.h.bf16 %v1834_v9  ;;  %v1094_v22 = vunpack.c.l.bf16 %v1834_v9 }
 0x361   : > { %v1075_v17 = vpack.c.bf16 %v1050_v11, %v1047_v10  ;;  %v1122_v18 = vmul.f32 %v2432_v52, %v1097_v13  ;;  %v1121_v19 = vmul.f32 %v2432_v52, %v1096_v14 }
 0x362   : > { %v1074_v21 = vpack.c.bf16 %v1042_v16, %v1039_v15  ;;  %v1120_v26 = vmul.f32 %v2432_v52, %v1095_v20  ;;  %v1119_v30 = vmul.f32 %v2432_v52, %v1094_v22 }
 0x363   : > { %1839 = vtanh.bf16 %v1075_v17  ;;  %1148 = vadd.xlane.f32.xlu1 %v1122_v18 }
 0x364   : > { %1841 = vtanh.bf16 %v1074_v21  ;;  %v1661_v23 = vpop.f32.mrb[24].mxu1  ;;  %1146 = vadd.xlane.f32.xlu0 %v1121_v19 }
 0x365   : > { %v1063_v24 = vadd.f32 %v1661_v23, %v2419_v28  ;;  %v1054_v25 = vpop.f32.mrb[25].mxu1 }
 0x366   : > { %v1836_v27 = vpop.eup %1835  ;;  %v1662_v29 = vpop.f32.mrb[26].mxu1  ;;  %v1055_v36 = vadd.f32 %v2419_v28, %v1054_v25 }
 0x367   : > { %v1838_v31 = vpop.eup %1837  ;;  %v1077_v32 = vpack.c.bf16 %v1063_v24, %v1063_v24  ;;  %v1057_v33 = vpop.f32.mrb[27].mxu1  ;;  %1144 = vadd.xlane.f32.xlu1 %v1120_v26  ;;  %v1101_v34 = vunpack.c.h.bf16 %v1836_v27  ;;  %v1100_v35 = vunpack.c.l.bf16 %v1836_v27 }
 0x368   : > { %v1058_v37 = vadd.f32 %v2419_v28, %v1057_v33  ;;  %1142 = vadd.xlane.f32.xlu0 %v1119_v30  ;;  %v1099_v40 = vunpack.c.h.bf16 %v1838_v31  ;;  %v1098_v42 = vunpack.c.l.bf16 %v1838_v31 }
 0x369   : > { %v1126_v38 = vmul.f32 %v2432_v52, %v1101_v34  ;;  %v1125_v39 = vmul.f32 %v2432_v52, %v1100_v35  ;;  %1843 = vtanh.bf16 %v1077_v32 }
 0x36a   : > { %v1076_v41 = vpack.c.bf16 %v1058_v37, %v1055_v36  ;;  %v1124_v43 = vmul.f32 %v2432_v52, %v1099_v40  ;;  %v1123_v45 = vmul.f32 %v2432_v52, %v1098_v42 }
 0x36b   : > { %1156 = vadd.xlane.f32.xlu1 %v1126_v38 }
 0x36c   : > { %1845 = vtanh.bf16 %v1076_v41  ;;  %1154 = vadd.xlane.f32.xlu0 %v1125_v39 }
 0x36e   : > { %v1840_v44 = vpop.eup %1839 }
 0x36f   : > { %v1842_v46 = vpop.eup %1841  ;;  %1152 = vadd.xlane.f32.xlu1 %v1124_v43  ;;  %v1105_v28 = vunpack.c.h.bf16 %v1840_v44  ;;  %v1104_v47 = vunpack.c.l.bf16 %v1840_v44 }
 0x370   : > { %1150 = vadd.xlane.f32.xlu0 %v1123_v45  ;;  %v1103_v50 = vunpack.c.h.bf16 %v1842_v46  ;;  %v1102_v51 = vunpack.c.l.bf16 %v1842_v46 }
 0x371   : > { %v1130_v48 = vmul.f32 %v2432_v52, %v1105_v28  ;;  %v1129_v49 = vmul.f32 %v2432_v52, %v1104_v47 }
 0x372   : > { %v1128_v53 = vmul.f32 %v2432_v52, %v1103_v50  ;;  %v1127_v55 = vmul.f32 %v2432_v52, %v1102_v51 }
 0x373   : > { %1164 = vadd.xlane.f32.xlu1 %v1130_v48 }
 0x374   : > { %1162 = vadd.xlane.f32.xlu0 %v1129_v49  ;;  %v1844_v54 = vpop.eup %1843 }
 0x375   : > { %v1108_v61 = vunpack.c.l.bf16 %v1844_v54 }
 0x377   : > { %v1846_v56 = vpop.eup %1845  ;;  %1160 = vadd.xlane.f32.xlu1 %v1128_v53  ;;  %v1133_v62 = vmul.f32 %v2432_v52, %v1108_v61 }
 0x378   : > { %1158 = vadd.xlane.f32.xlu0 %v1127_v55  ;;  %v1107_v57 = vunpack.c.h.bf16 %v1846_v56  ;;  %v1106_v58 = vunpack.c.l.bf16 %v1846_v56 }
 0x37a   : > { %v1132_v59 = vmul.f32 %v2432_v52, %v1107_v57  ;;  %v1131_v60 = vmul.f32 %v2432_v52, %v1106_v58 }
 0x37c   : > { %1168 = vadd.xlane.f32.xlu1 %v1132_v59  ;;  %1166 = vadd.xlane.f32.xlu0 %v1131_v60 }
 0x380   : > { %1170 = vadd.xlane.f32.xlu0 %v1133_v62 }
 0x3e8   : > { %v1139_v0 = vpop.xlane.xlu1 %1138 }
 0x3e9   : > { %v1180_v1 = vadd.f32 %v2464_v63, %v1139_v0  ;;  %v1135_v2 = vpop.xlane.xlu0 %1134 }
 0x3ea   : > { %v1178_v3 = vadd.f32 %v2464_v63, %v1135_v2 }
 0x3eb   : > { %v1481_v4 = vmul.f32 -1.442695, %v1180_v1 }
 0x3ec   : > { %v1479_v5 = vmul.f32 -1.442695, %v1178_v3  ;;  %v1141_v6 = vpop.xlane.xlu1 %1140 }
 0x3ed   : > { %1847 = vpow2.f32 %v1481_v4  ;;  %v1181_v7 = vadd.f32 %v2464_v63, %v1141_v6  ;;  %v1137_v8 = vpop.xlane.xlu0 %1136 }
 0x3ee   : > { %1849 = vpow2.f32 %v1479_v5  ;;  %v1179_v52 = vadd.f32 %v2464_v63, %v1137_v8 }
 0x3ef   : > { %v1482_v9 = vmul.f32 -1.442695, %v1181_v7 }
 0x3f0   : > { %v1480_v10 = vmul.f32 -1.442695, %v1179_v52  ;;  %v1149_v11 = vpop.xlane.xlu1 %1148 }
 0x3f1   : > { %1851 = vpow2.f32 %v1482_v9  ;;  %v1185_v12 = vadd.f32 %v2464_v63, %v1149_v11  ;;  %v1147_v13 = vpop.xlane.xlu0 %1146 }
 0x3f2   : > { %1853 = vpow2.f32 %v1480_v10  ;;  %v1184_v14 = vadd.f32 %v2464_v63, %v1147_v13 }
 0x3f3   : > { %v1486_v15 = vmul.f32 -1.442695, %v1185_v12 }
 0x3f4   : > { %v1485_v16 = vmul.f32 -1.442695, %v1184_v14  ;;  %v1145_v17 = vpop.xlane.xlu1 %1144 }
 0x3f5   : > { %1855 = vpow2.f32 %v1486_v15  ;;  %v1183_v18 = vadd.f32 %v2464_v63, %v1145_v17  ;;  %v1143_v19 = vpop.xlane.xlu0 %1142 }
 0x3f6   : > { %1857 = vpow2.f32 %v1485_v16  ;;  %v1182_v20 = vadd.f32 %v2464_v63, %v1143_v19 }
 0x3f7   : > { %v1848_v21 = vpop.eup %1847  ;;  %v1484_v22 = vmul.f32 -1.442695, %v1183_v18 }
 0x3f8   : > { %v1850_v23 = vpop.eup %1849  ;;  %v1256_v24 = vadd.f32 1.0, %v1848_v21  ;;  %v1483_v25 = vmul.f32 -1.442695, %v1182_v20  ;;  %v1157_v26 = vpop.xlane.xlu1 %1156 }
 0x3f9   : > { %v1254_v27 = vadd.f32 1.0, %v1850_v23  ;;  %1859 = vpow2.f32 %v1484_v22  ;;  %v1189_v29 = vadd.f32 %v2464_v63, %v1157_v26  ;;  %v1155_v30 = vpop.xlane.xlu0 %1154 }
 0x3fa   : > { %1861 = vrcp.f32 %v1256_v24  ;;  %v1188_v31 = vadd.f32 %v2464_v63, %v1155_v30 }
 0x3fb   : > { %v1852_v32 = vpop.eup %1851  ;;  %1863 = vrcp.f32 %v1254_v27  ;;  %v1490_v33 = vmul.f32 -1.442695, %v1189_v29 }
 0x3fc   : > { %v1854_v34 = vpop.eup %1853  ;;  %v1257_v35 = vadd.f32 1.0, %v1852_v32  ;;  %1865 = vpow2.f32 %v1483_v25  ;;  %v1489_v36 = vmul.f32 -1.442695, %v1188_v31  ;;  %v1153_v37 = vpop.xlane.xlu1 %1152 }
 0x3fd   : > { %v1255_v38 = vadd.f32 1.0, %v1854_v34  ;;  %1867 = vpow2.f32 %v1490_v33  ;;  %v1187_v39 = vadd.f32 %v2464_v63, %v1153_v37  ;;  %v1151_v40 = vpop.xlane.xlu0 %1150 }
 0x3fe   : > { %1869 = vrcp.f32 %v1257_v35  ;;  %v1186_v41 = vadd.f32 %v2464_v63, %v1151_v40 }
 0x3ff   : > { %v1856_v42 = vpop.eup %1855  ;;  %1871 = vrcp.f32 %v1255_v38  ;;  %v1488_v43 = vmul.f32 -1.442695, %v1187_v39 }
 0x400   : > { %v1858_v44 = vpop.eup %1857  ;;  %v1261_v45 = vadd.f32 1.0, %v1856_v42  ;;  %1873 = vpow2.f32 %v1489_v36  ;;  %v1487_v46 = vmul.f32 -1.442695, %v1186_v41  ;;  %v1165_v28 = vpop.xlane.xlu1 %1164 }
 0x401   : > { %v1260_v47 = vadd.f32 1.0, %v1858_v44  ;;  %1875 = vpow2.f32 %v1488_v43  ;;  %v1193_v48 = vadd.f32 %v2464_v63, %v1165_v28  ;;  %v1163_v49 = vpop.xlane.xlu0 %1162 }
 0x402   : > { %1877 = vrcp.f32 %v1261_v45  ;;  %v1192_v50 = vadd.f32 %v2464_v63, %v1163_v49 }
 0x403   : > { %v1860_v51 = vpop.eup %1859  ;;  %1879 = vrcp.f32 %v1260_v47  ;;  %v1494_v53 = vmul.f32 -1.442695, %v1193_v48 }
 0x404   : > { %v1862_v54 = vpop.eup %1861  ;;  %v1259_v55 = vadd.f32 1.0, %v1860_v51  ;;  %1881 = vpow2.f32 %v1487_v46  ;;  %v1493_v56 = vmul.f32 -1.442695, %v1192_v50  ;;  %v1161_v57 = vpop.xlane.xlu1 %1160 }
 0x405   : > { %v1864_v58 = vpop.eup %1863  ;;  %1314 = vst.msk [vmem:[%s2484_s20 + $0x10] sm:$0xff] %vm1311_vm0, %v1862_v54  ;;  %1883 = vpow2.f32 %v1494_v53  ;;  %v1191_v59 = vadd.f32 %v2464_v63, %v1161_v57  ;;  %v1159_v60 = vpop.xlane.xlu0 %1158 }
 0x406   : > { %v1866_v61 = vpop.eup %1865  ;;  %1312 = vst.msk [vmem:[%s2484_s20] sm:$0xff] %vm1311_vm0, %v1864_v58  ;;  %1885 = vrcp.f32 %v1259_v55  ;;  %v1190_v62 = vadd.f32 %v2464_v63, %v1159_v60 }
 0x407   : > { %v1868_v0 = vpop.eup %1867  ;;  %v1258_v1 = vadd.f32 1.0, %v1866_v61  ;;  %1887 = vpow2.f32 %v1493_v56  ;;  %v1492_v2 = vmul.f32 -1.442695, %v1191_v59 }
 0x408   : > { %v1870_v3 = vpop.eup %1869  ;;  %v1265_v4 = vadd.f32 1.0, %v1868_v0  ;;  %v1491_v5 = vmul.f32 -1.442695, %v1190_v62 }
 0x409   : > { %v1872_v6 = vpop.eup %1871  ;;  %1315 = vst.msk [vmem:[%s2484_s20 + $0x18] sm:$0xff] %vm1311_vm0, %v1870_v3  ;;  %1889 = vrcp.f32 %v1258_v1  ;;  %v1169_v7 = vpop.xlane.xlu1 %1168 }
 0x40a   : > { %v1167_v8 = vpop.xlane.xlu0 %1166  ;;  %v1874_v52 = vpop.eup %1873  ;;  %1313 = vst.msk [vmem:[%s2484_s20 + $0x8] sm:$0xff] %vm1311_vm0, %v1872_v6  ;;  %1891 = vrcp.f32 %v1265_v4  ;;  %v1195_v9 = vadd.f32 %v2464_v63, %v1169_v7 }
 0x40b   : > { %v1194_v10 = vadd.f32 %v2464_v63, %v1167_v8  ;;  %v1876_v11 = vpop.eup %1875  ;;  %v1264_v12 = vadd.f32 1.0, %v1874_v52  ;;  %1893 = vpow2.f32 %v1492_v2 }
 0x40c   : > { %v1878_v13 = vpop.eup %1877  ;;  %v1263_v14 = vadd.f32 1.0, %v1876_v11  ;;  %1895 = vpow2.f32 %v1491_v5  ;;  %v1496_v15 = vmul.f32 -1.442695, %v1195_v9 }
 0x40d   : > { %v1495_v16 = vmul.f32 -1.442695, %v1194_v10  ;;  %v1880_v17 = vpop.eup %1879  ;;  %1319 = vst.msk [vmem:[%s2484_s20 + $0x38] sm:$0xff] %vm1311_vm0, %v1878_v13  ;;  %1897 = vrcp.f32 %v1264_v12 }
 0x40e   : > { %v1171_v18 = vpop.xlane.xlu0 %1170  ;;  %v1882_v19 = vpop.eup %1881  ;;  %1318 = vst.msk [vmem:[%s2484_s20 + $0x30] sm:$0xff] %vm1311_vm0, %v1880_v17  ;;  %1899 = vrcp.f32 %v1263_v14 }
 0x40f   : > { %v1196_v20 = vadd.f32 %v2464_v63, %v1171_v18  ;;  %v1884_v21 = vpop.eup %1883  ;;  %v1262_v22 = vadd.f32 1.0, %v1882_v19  ;;  %1901 = vpow2.f32 %v1496_v15 }
 0x410   : > { %v1886_v23 = vpop.eup %1885  ;;  %v1269_v24 = vadd.f32 1.0, %v1884_v21  ;;  %1903 = vpow2.f32 %v1495_v16 }
 0x411   : > { %v1497_v25 = vmul.f32 -1.442695, %v1196_v20  ;;  %v1888_v26 = vpop.eup %1887  ;;  %1317 = vst.msk [vmem:[%s2484_s20 + $0x28] sm:$0xff] %vm1311_vm0, %v1886_v23  ;;  %1905 = vrcp.f32 %v1262_v22 }
 0x412   : > { %1907 = vrcp.f32 %v1269_v24  ;;  %v1268_v27 = vadd.f32 1.0, %v1888_v26 }
 0x413   : > { %v1890_v29 = vpop.eup %1889  ;;  %1909 = vpow2.f32 %v1497_v25 }
 0x414   : > { %v1892_v63 = vpop.eup %1891  ;;  %1316 = vst.msk [vmem:[%s2484_s20 + $0x20] sm:$0xff] %vm1311_vm0, %v1890_v29  ;;  %1911 = vrcp.f32 %v1268_v27 }
 0x415   : > { %v1894_v30 = vpop.eup %1893  ;;  %1323 = vst.msk [vmem:[%s2484_s20 + $0x58] sm:$0xff] %vm1311_vm0, %v1892_v63 }
 0x416   : > { %v1896_v31 = vpop.eup %1895  ;;  %v1267_v32 = vadd.f32 1.0, %v1894_v30 }
 0x417   : > { %v1898_v33 = vpop.eup %1897  ;;  %v1266_v34 = vadd.f32 1.0, %v1896_v31 }
 0x418   : > { %v1900_v35 = vpop.eup %1899  ;;  %1322 = vst.msk [vmem:[%s2484_s20 + $0x50] sm:$0xff] %vm1311_vm0, %v1898_v33  ;;  %1913 = vrcp.f32 %v1267_v32 }
 0x419   : > { %v1902_v36 = vpop.eup %1901  ;;  %1321 = vst.msk [vmem:[%s2484_s20 + $0x48] sm:$0xff] %vm1311_vm0, %v1900_v35  ;;  %1915 = vrcp.f32 %v1266_v34 }
 0x41a   : > { %v1904_v37 = vpop.eup %1903  ;;  %v1271_v38 = vadd.f32 1.0, %v1902_v36 }
 0x41b   : > { %v1906_v39 = vpop.eup %1905  ;;  %v1270_v40 = vadd.f32 1.0, %v1904_v37 }
 0x41c   : > { %v1908_v41 = vpop.eup %1907  ;;  %1320 = vst.msk [vmem:[%s2484_s20 + $0x40] sm:$0xff] %vm1311_vm0, %v1906_v39  ;;  %1917 = vrcp.f32 %v1271_v38 }
 0x41d   : > { %v1910_v42 = vpop.eup %1909  ;;  %1327 = vst.msk [vmem:[%s2484_s20 + $0x78] sm:$0xff] %vm1311_vm0, %v1908_v41  ;;  %1919 = vrcp.f32 %v1270_v40 }
 0x41e   : > { %v1912_v43 = vpop.eup %1911  ;;  %v1272_v44 = vadd.f32 1.0, %v1910_v42 }
 0x41f   : > { %1326 = vst.msk [vmem:[%s2484_s20 + $0x70] sm:$0xff] %vm1311_vm0, %v1912_v43 }
 0x420   : > { %1921 = vrcp.f32 %v1272_v44 }
 0x422   : > { %v1914_v45 = vpop.eup %1913 }
 0x423   : > { %v1916_v46 = vpop.eup %1915  ;;  %1325 = vst.msk [vmem:[%s2484_s20 + $0x68] sm:$0xff] %vm1311_vm0, %v1914_v45 }
 0x424   : > { %1324 = vst.msk [vmem:[%s2484_s20 + $0x60] sm:$0xff] %vm1311_vm0, %v1916_v46 }
 0x426   : > { %v1918_v28 = vpop.eup %1917 }
 0x427   : > { %v1920_v47 = vpop.eup %1919  ;;  %1329 = vst.msk [vmem:[%s2484_s20 + $0x88] sm:$0xff] %vm1311_vm0, %v1918_v28 }
 0x428   : > { %1328 = vst.msk [vmem:[%s2484_s20 + $0x80] sm:$0xff] %vm1311_vm0, %v1920_v47 }
 0x42a   : > { %v1922_v48 = vpop.eup %1921 }
 0x42b   : > { %1330 = vst.msk [vmem:[%s2484_s20 + $0x90] sm:$0xff] %vm1311_vm0, %v1922_v48 }
 0x42c PF: > { %p23_p11 = scmp.ge.s32.totalorder %s2273_s30, 4   ;;  %s2570_s11 = smov %s2071_s12 }
 0x42d   : > { %s2571_s12 = smov %s2075_s13  ;;  %s2572_s13 = smov %s2283_s26 }
 0x42e   : > { %s2573_s14 = smov %s2273_s30  ;;  %25 = sbr.rel (!%p23_p11) target bundleno = 8 (0x8), region = 108 }
 0x435   :  { %1353 = vsyncpa [#allocation4], 1 }
 0x436   :  { %1355 = vsyncpa [#allocation4 + $0x1], 1 }
 0x437   :  { %1356 = vsyncpa [#allocation6], 1 }
 0x438   :  { %1357 = vsyncpa [#allocation9], 1 }

</bundles_post_ra>
